<compile_context>
chip_gen: v5e
topology: v5e:2x2
jax: 0.10.0
libtpu: 0.0.40
codegen_flags: <defaults>
</compile_context>

<pallas_src>
import functools

import jax
import jax.numpy as jnp
from jax.experimental import pallas as pl
from jax.experimental.pallas import tpu as pltpu

BETA = 0.95          # snn.Leaky beta
THRESH = 1.0         # snn.Leaky default threshold
NUM_STEPS = 25       # module-level num_steps
LANES = 128          # TPU lane width: channel axes are zero-padded to this


# ------------------------------ Pallas kernels -------------------------------

def _conv_pool_lif_kernel(a_ref, w_ref, b_ref, spk_ref, mem_ref):
    """Fused conv (im2col GEMM) + 2x2 max-pool + bias + snn.Leaky time step.

    grid = (P, T): P parallel row blocks, T time steps ("arbitrary"); the
    membrane carries across T in VMEM scratch.

    a_ref  : (4, tr, K) bf16 -- the 4 pool-window variants of the patch rows
    w_ref  : (K, 128)  bf16  -- conv weight, out-channels zero-padded to lanes
    b_ref  : (1, 128)  f32
    spk_ref: (tr, 128) bf16  -- spikes for this (row block, time step)
    mem_ref: (tr, 128) f32   -- membrane scratch (init_leaky() -> zeros)
    """
    @pl.when(pl.program_id(1) == 0)
    def _():
        mem_ref[...] = jnp.zeros_like(mem_ref)

    u, tr, k = a_ref.shape
    # Single long MXU stream: one (4*tr, K) GEMM, then max over the 4 pool
    # variants (== fused 2x2 max-pool) and bias.
    acc = jnp.dot(a_ref[...].reshape(u * tr, k), w_ref[...],
                  preferred_element_type=jnp.float32)
    cur = acc.reshape(u, tr, LANES).max(axis=0) + b_ref[...]

    mem = mem_ref[...]
    reset = (mem > THRESH).astype(jnp.float32)
    mem_new = BETA * mem + cur - reset * THRESH
    spk_ref[...] = (mem_new > THRESH).astype(spk_ref.dtype)
    mem_ref[...] = mem_new


def _conv_lif_fc_lif_kernel(a_ref, w2_ref, b2_ref, w3_ref, b3_ref,
                            spk3_ref, mem3_ref, mem2_sc, mem3_sc, *,
                            batch, positions):
    """Fused conv2 GEMM + pool + LIF2 + fc1 + LIF3 for one time step.

    a_ref  : (4, positions*batch, K2) bf16, rows ordered (spatial pos, batch)
    w2_ref : (K2, 128) bf16
    w3_ref : (positions, 128, 128) bf16 -- fc1 weight per spatial position,
             channel rows (>= C2) and output columns (>= n_out) zero-padded
    spk3_ref / mem3_ref : (1, batch, 128) f32 per-step outputs
    mem2_sc: (positions*batch, 128) f32;  mem3_sc: (batch, 128) f32
    """
    @pl.when(pl.program_id(0) == 0)
    def _():
        mem2_sc[...] = jnp.zeros_like(mem2_sc)
        mem3_sc[...] = jnp.zeros_like(mem3_sc)

    u, rows, k = a_ref.shape
    acc = jnp.dot(a_ref[...].reshape(u * rows, k), w2_ref[...],
                  preferred_element_type=jnp.float32)
    cur2 = acc.reshape(u, rows, LANES).max(axis=0) + b2_ref[...]

    mem2 = mem2_sc[...]
    reset2 = (mem2 > THRESH).astype(jnp.float32)
    mem2n = BETA * mem2 + cur2 - reset2 * THRESH
    spk2 = (mem2n > THRESH).astype(jnp.bfloat16)      # exact 0/1 in bf16
    mem2_sc[...] = mem2n

    # fc1: spk2 rows are (spatial pos s, batch); contract the padded channel
    # lanes against the per-position weight slab and sum over positions.
    cur3 = jnp.zeros((batch, LANES), jnp.float32)
    for s in range(positions):
        cur3 = cur3 + jnp.dot(spk2[s * batch:(s + 1) * batch, :], w3_ref[s],
                              preferred_element_type=jnp.float32)
    cur3 = cur3 + b3_ref[...]

    mem3 = mem3_sc[...]
    reset3 = (mem3 > THRESH).astype(jnp.float32)
    mem3n = BETA * mem3 + cur3 - reset3 * THRESH
    spk3_ref[...] = ((mem3n > THRESH).astype(jnp.float32))[None]
    mem3_ref[...] = mem3n[None]
    mem3_sc[...] = mem3n


# ------------------------------ Pallas wrappers -------------------------------

def conv_pool_lif(a4, w, b, num_steps, rows_per_step, row_blocks):
    """One pallas_call: conv+pool GEMM fused with the Leaky scan over time."""
    U, M, K = a4.shape
    tr = rows_per_step // row_blocks
    return pl.pallas_call(
        _conv_pool_lif_kernel,
        out_shape=jax.ShapeDtypeStruct((M, LANES), jnp.bfloat16),
        grid=(row_blocks, num_steps),
        in_specs=[
            pl.BlockSpec((U, tr, K), lambda p, t: (0, t * row_blocks + p, 0)),
            pl.BlockSpec((K, LANES), lambda p, t: (0, 0)),
            pl.BlockSpec((1, LANES), lambda p, t: (0, 0)),
        ],
        out_specs=pl.BlockSpec((tr, LANES), lambda p, t: (t * row_blocks + p, 0)),
        scratch_shapes=[pltpu.VMEM((tr, LANES), jnp.float32)],
        compiler_params=pltpu.CompilerParams(
            dimension_semantics=("parallel", "arbitrary")),
    )(a4, w, b)


def conv_lif_fc_lif(a4, w2, b2, w3, b3, num_steps, batch, positions):
    """One pallas_call: conv2+pool GEMM + LIF2 + fc1 + LIF3 over all steps."""
    U, M, K = a4.shape
    rows = positions * batch
    kernel = functools.partial(_conv_lif_fc_lif_kernel, batch=batch,
                               positions=positions)
    return pl.pallas_call(
        kernel,
        out_shape=(jax.ShapeDtypeStruct((num_steps, batch, LANES), jnp.float32),
                   jax.ShapeDtypeStruct((num_steps, batch, LANES), jnp.float32)),
        grid=(num_steps,),
        in_specs=[
            pl.BlockSpec((U, rows, K), lambda t: (0, t, 0)),
            pl.BlockSpec((K, LANES), lambda t: (0, 0)),
            pl.BlockSpec((1, LANES), lambda t: (0, 0)),
            pl.BlockSpec((positions, LANES, LANES), lambda t: (0, 0, 0)),
            pl.BlockSpec((1, LANES), lambda t: (0, 0)),
        ],
        out_specs=(pl.BlockSpec((1, batch, LANES), lambda t: (t, 0, 0)),
                   pl.BlockSpec((1, batch, LANES), lambda t: (t, 0, 0))),
        scratch_shapes=[pltpu.VMEM((rows, LANES), jnp.float32),
                        pltpu.VMEM((batch, LANES), jnp.float32)],
        compiler_params=pltpu.CompilerParams(
            dimension_semantics=("arbitrary",)),
    )(a4, w2, b2, w3, b3)


# -------------------------------- plain-JAX glue ------------------------------

def _pad_lanes(m):
    return jnp.pad(m, ((0, 0), (0, LANES - m.shape[-1])))


def _im2col_pooled(x, k, *, batch=None):
    """x: (N, H, W, C) -> (4, rows, C*k*k) patch rows for a valid kxk conv
    followed by a floor 2x2/2 max-pool.  Axis 0 indexes the pool-window element
    (u = 2*dy + dx); columns are (c, kh, kw) so torch's Conv2d weight
    `w.reshape(Cout, C*k*k)` applies unchanged.  Rows are (n, ph, pw), or
    (t, ph, pw, b) when `batch` is given (layout the fused stage-2 kernel
    consumes for the per-position fc1 contraction)."""
    N, H, W, C = x.shape
    Ho, Wo = H - k + 1, W - k + 1
    Hp, Wp = Ho // 2, Wo // 2
    cols = [x[:, kh:kh + Ho, kw:kw + Wo, :] for kh in range(k) for kw in range(k)]
    p = jnp.stack(cols, axis=-1)                      # (N, Ho, Wo, C, k*k)
    p = p[:, :2 * Hp, :2 * Wp]
    p = p.reshape(N, Hp, 2, Wp, 2, C * k * k)
    if batch is None:
        p = p.transpose(2, 4, 0, 1, 3, 5)             # (dy, dx, n, ph, pw, K)
        return p.reshape(4, N * Hp * Wp, C * k * k)
    steps = N // batch
    p = p.reshape(steps, batch, Hp, 2, Wp, 2, C * k * k)
    p = p.transpose(3, 5, 0, 2, 4, 1, 6)              # (dy, dx, t, ph, pw, b, K)
    return p.reshape(4, steps * Hp * Wp * batch, C * k * k)


def _pick_row_blocks(rows):
    # Split the spatially-independent rows across 2 TensorCores when possible.
    return 2 if (rows % 2 == 0 and (rows // 2) % 8 == 0) else 1


# -------------------------------- Net.forward ---------------------------------

def net_forward(x, params):
    """x: (B, T, 2, H, W) f32.  Returns (spk3_rec, mem3_rec), each (T, B, 2),
    matching torch.stack(..., dim=0) of the per-step (B, 2) outputs."""
    w1, b1, w2, b2, wfc, bfc = params
    B, T, Cin, H, W = x.shape
    C1, C2, n_out = w1.shape[0], w2.shape[0], wfc.shape[0]

    # stage 0: 4x4 max-pool on the raw input, time-major NHWC, bf16.
    # TODO(synk): pool + transpose + cast is still a couple of XLA passes.
    H4, W4 = H // 4, W // 4
    p0 = (x[:, :, :, :H4 * 4, :W4 * 4]
          .reshape(B, T, Cin, H4, 4, W4, 4).max(axis=(4, 6)))
    p0 = p0.transpose(1, 0, 3, 4, 2).reshape(T * B, H4, W4, Cin).astype(jnp.bfloat16)

    # stage 1: conv1(5x5) + 2x2 max-pool + LIF1, fused in one pallas_call.
    # TODO(synk): im2col patch build (a1) is still host-side XLA.
    Hp1, Wp1 = (H4 - 4) // 2, (W4 - 4) // 2
    rows1 = B * Hp1 * Wp1
    a1 = _im2col_pooled(p0, 5)                                   # (4, T*rows1, 50)
    w1m = _pad_lanes(w1.reshape(C1, -1).T).astype(jnp.bfloat16)
    b1m = _pad_lanes(b1.reshape(1, -1)).astype(jnp.float32)
    spk1 = conv_pool_lif(a1, w1m, b1m, T, rows1, _pick_row_blocks(rows1))

    # stage 2: conv2(5x5) + pool + LIF2 + fc1 + LIF3, fused in one pallas_call.
    # The :C1 channel slice fuses into the patch gather (spikes stay bf16).
    Hp2, Wp2 = (Hp1 - 4) // 2, (Wp1 - 4) // 2
    s1 = spk1.reshape(T, B, Hp1, Wp1, LANES)[..., :C1].reshape(T * B, Hp1, Wp1, C1)
    a2 = _im2col_pooled(s1, 5, batch=B)                          # rows (t,ph,pw,b)
    w2m = _pad_lanes(w2.reshape(C2, -1).T).astype(jnp.bfloat16)
    b2m = _pad_lanes(b2.reshape(1, -1)).astype(jnp.float32)
    # fc1 weight per spatial position s = ph*Wp2 + pw (torch flattens (c,h,w)).
    wfc_s = wfc.reshape(n_out, C2, Hp2 * Wp2).transpose(2, 1, 0)  # (S, C2, n_out)
    wfc_s = jnp.pad(wfc_s, ((0, 0), (0, LANES - C2), (0, LANES - n_out))
                    ).astype(jnp.bfloat16)
    b3m = _pad_lanes(bfc.reshape(1, -1)).astype(jnp.float32)
    spk3p, mem3p = conv_lif_fc_lif(a2, w2m, b2m, wfc_s, b3m, T, B, Hp2 * Wp2)

    return spk3p[:, :, :n_out], mem3p[:, :, :n_out]


# ------------------------------------ main -------------------------------------

if __name__ == "__main__":
    B, T, Cin, H, W = 2, NUM_STEPS, 2, 80, 112    # scaled-down spatial size

    # fc1 in_features at this scale (module used 32*42*77 for 720x1280 input)
    ph = ((H // 4 - 4) // 2 - 4) // 2
    pw = ((W // 4 - 4) // 2 - 4) // 2
    fc_in = 32 * ph * pw                          # = 256

    key = jax.random.PRNGKey(0)
    k1, k2, k3, k4, k5, k6, kx = jax.random.split(key, 7)

    # deterministic synthetic parameters (shapes follow __init__)
    w1 = jax.random.normal(k1, (16, 2, 5, 5), jnp.float32) / jnp.sqrt(2 * 25)
    b1 = 0.1 * jax.random.normal(k2, (16,), jnp.float32)
    w2 = jax.random.normal(k3, (32, 16, 5, 5), jnp.float32) / jnp.sqrt(16 * 25)
    b2 = 0.1 * jax.random.normal(k4, (32,), jnp.float32)
    wfc = jax.random.normal(k5, (2, fc_in), jnp.float32) / jnp.sqrt(fc_in)
    bfc = 0.1 * jax.random.normal(k6, (2,), jnp.float32)
    params = (w1, b1, w2, b2, wfc, bfc)

    x = jax.random.normal(kx, (B, T, Cin, H, W), jnp.float32)

    fwd = jax.jit(net_forward)
    spk3_rec, mem3_rec = fwd(x, params)
    jax.block_until_ready((spk3_rec, mem3_rec))

    assert spk3_rec.shape == (T, B, 2) and mem3_rec.shape == (T, B, 2)
    assert bool(jnp.all(jnp.isfinite(mem3_rec)))
    assert bool(jnp.all((spk3_rec == 0.0) | (spk3_rec == 1.0)))
    print("KERNEL_OK")
</pallas_src>

<mosaic_0001>
module attributes {stable_mosaic.version = 11 : i64} {
  func.func @_conv_pool_lif_kernel(%arg0: i32, %arg1: i32, %arg2: memref<4x96x50xbf16, #tpu.memory_space<vmem>>, %arg3: memref<50x128xbf16, #tpu.memory_space<vmem>>, %arg4: memref<1x128xf32, #tpu.memory_space<vmem>>, %arg5: memref<96x128xbf16, #tpu.memory_space<vmem>>, %arg6: memref<96x128xf32, #tpu.memory_space<vmem>>) attributes {dimension_semantics = [#tpu.dimension_semantics<parallel>, #tpu.dimension_semantics<arbitrary>], iteration_bounds = array<i64: 2, 25>, scalar_prefetch = 0 : i64, scratch_operands = 1 : i64, tpu.core_type = #tpu.core_type<tc>, window_params = [{transform_indices = @transform_0, window_bounds = array<i64: 4, 96, 50>}, {pipeline_mode = #tpu.pipeline_mode<synchronous>, transform_indices = @transform_1, window_bounds = array<i64: 50, 128>}, {pipeline_mode = #tpu.pipeline_mode<synchronous>, transform_indices = @transform_2, window_bounds = array<i64: 1, 128>}, {transform_indices = @transform_3, window_bounds = array<i64: 96, 128>}]} {
    %c0_i32 = arith.constant 0 : i32
    %0 = arith.cmpi eq, %arg1, %c0_i32 : i32
    %1 = arith.extui %0 : i1 to i32
    %c0_i32_0 = arith.constant 0 : i32
    %2 = arith.cmpi ne, %1, %c0_i32_0 : i32
    scf.if %2 {
      %cst_18 = arith.constant 0.000000e+00 : f32
      %30 = vector.broadcast %cst_18 : f32 to vector<96x128xf32>
      %c0_19 = arith.constant 0 : index
      %c0_20 = arith.constant 0 : index
      %31 = vector.load %arg6[%c0_19, %c0_20] : memref<96x128xf32, #tpu.memory_space<vmem>>, vector<96x128xf32>
      tpu.vector_store %arg6[%c0_19, %c0_20], %30 {strides = array<i32>} : memref<96x128xf32, #tpu.memory_space<vmem>>, vector<96x128xf32>,
    } else {
    }
    %c0 = arith.constant 0 : index
    %c0_1 = arith.constant 0 : index
    %c0_2 = arith.constant 0 : index
    %3 = vector.load %arg2[%c0, %c0_1, %c0_2] : memref<4x96x50xbf16, #tpu.memory_space<vmem>>, vector<4x96x50xbf16>
    %4 = vector.shape_cast %3 : vector<4x96x50xbf16> to vector<384x50xbf16>
    %c0_3 = arith.constant 0 : index
    %c0_4 = arith.constant 0 : index
    %5 = vector.load %arg3[%c0_3, %c0_4] : memref<50x128xbf16, #tpu.memory_space<vmem>>, vector<50x128xbf16>
    %cst = arith.constant dense<0.000000e+00> : vector<384x128xf32>
    %6 = tpu.matmul %4, %5, %cst {dimension_numbers = #tpu.dot_dimension_numbers<[1], [0], [0], [1], [0, 0, 1, 1], [], []>} : vector<384x50xbf16>, vector<50x128xbf16>, vector<384x128xf32> -> vector<384x128xf32>
    %7 = vector.shape_cast %6 : vector<384x128xf32> to vector<4x96x128xf32>
    %cst_5 = arith.constant dense<0xFF800000> : vector<96x128xf32>
    %8 = vector.multi_reduction <maximumf>, %7, %cst_5 [0] : vector<4x96x128xf32> to vector<96x128xf32>
    %c0_6 = arith.constant 0 : index
    %c0_7 = arith.constant 0 : index
    %9 = vector.load %arg4[%c0_6, %c0_7] : memref<1x128xf32, #tpu.memory_space<vmem>>, vector<1x128xf32>
    %10 = vector.broadcast %9 : vector<1x128xf32> to vector<96x128xf32>
    %11 = arith.addf %8, %10 : vector<96x128xf32>
    %c0_8 = arith.constant 0 : index
    %c0_9 = arith.constant 0 : index
    %12 = vector.load %arg6[%c0_8, %c0_9] : memref<96x128xf32, #tpu.memory_space<vmem>>, vector<96x128xf32>
    %cst_10 = arith.constant 1.000000e+00 : f32
    %13 = vector.broadcast %cst_10 : f32 to vector<96x128xf32>
    %14 = arith.cmpf ogt, %12, %13 : vector<96x128xf32>
    %15 = arith.extui %14 : vector<96x128xi1> to vector<96x128xi32>
    %16 = arith.sitofp %15 : vector<96x128xi32> to vector<96x128xf32>
    %cst_11 = arith.constant 0.949999988 : f32
    %17 = vector.broadcast %cst_11 : f32 to vector<96x128xf32>
    %18 = arith.mulf %17, %12 : vector<96x128xf32>
    %19 = arith.addf %18, %11 : vector<96x128xf32>
    %cst_12 = arith.constant 1.000000e+00 : f32
    %20 = vector.broadcast %cst_12 : f32 to vector<96x128xf32>
    %21 = arith.mulf %16, %20 : vector<96x128xf32>
    %22 = arith.subf %19, %21 : vector<96x128xf32>
    %cst_13 = arith.constant 1.000000e+00 : f32
    %23 = vector.broadcast %cst_13 : f32 to vector<96x128xf32>
    %24 = arith.cmpf ogt, %22, %23 : vector<96x128xf32>
    %25 = arith.extui %24 : vector<96x128xi1> to vector<96x128xi32>
    %26 = arith.sitofp %25 : vector<96x128xi32> to vector<96x128xf32>
    %27 = arith.truncf %26 : vector<96x128xf32> to vector<96x128xbf16>
    %c0_14 = arith.constant 0 : index
    %c0_15 = arith.constant 0 : index
    %28 = vector.load %arg5[%c0_14, %c0_15] : memref<96x128xbf16, #tpu.memory_space<vmem>>, vector<96x128xbf16>
    tpu.vector_store %arg5[%c0_14, %c0_15], %27 {strides = array<i32>} : memref<96x128xbf16, #tpu.memory_space<vmem>>, vector<96x128xbf16>,
    %c0_16 = arith.constant 0 : index
    %c0_17 = arith.constant 0 : index
    %29 = vector.load %arg6[%c0_16, %c0_17] : memref<96x128xf32, #tpu.memory_space<vmem>>, vector<96x128xf32>
    tpu.vector_store %arg6[%c0_16, %c0_17], %22 {strides = array<i32>} : memref<96x128xf32, #tpu.memory_space<vmem>>, vector<96x128xf32>,
    return
  }
  func.func @transform_0(%arg0: i32, %arg1: i32) -> (i32, i32, i32) {
    %c2_i32 = arith.constant 2 : i32
    %0 = arith.muli %arg1, %c2_i32 : i32
    %1 = arith.addi %0, %arg0 : i32
    %c0_i32 = arith.constant 0 : i32
    %c0_i32_0 = arith.constant 0 : i32
    %c0_i32_1 = arith.constant 0 : i32
    return %c0_i32, %1, %c0_i32_0 : i32, i32, i32
  }
  func.func @transform_1(%arg0: i32, %arg1: i32) -> (i32, i32) {
    %c0_i32 = arith.constant 0 : i32
    %c0_i32_0 = arith.constant 0 : i32
    %c0_i32_1 = arith.constant 0 : i32
    return %c0_i32, %c0_i32_0 : i32, i32
  }
  func.func @transform_2(%arg0: i32, %arg1: i32) -> (i32, i32) {
    %c0_i32 = arith.constant 0 : i32
    %c0_i32_0 = arith.constant 0 : i32
    %c0_i32_1 = arith.constant 0 : i32
    return %c0_i32, %c0_i32_0 : i32, i32
  }
  func.func @transform_3(%arg0: i32, %arg1: i32) -> (i32, i32) {
    %c2_i32 = arith.constant 2 : i32
    %0 = arith.muli %arg1, %c2_i32 : i32
    %1 = arith.addi %0, %arg0 : i32
    %c0_i32 = arith.constant 0 : i32
    %c0_i32_0 = arith.constant 0 : i32
    return %1, %c0_i32 : i32, i32
  }
}

module attributes {stable_mosaic.version = 11 : i64} {
  func.func @_conv_lif_fc_lif_kernel(%arg0: i32, %arg1: memref<4x16x400xbf16, #tpu.memory_space<vmem>>, %arg2: memref<400x128xbf16, #tpu.memory_space<vmem>>, %arg3: memref<1x128xf32, #tpu.memory_space<vmem>>, %arg4: memref<8x128x128xbf16, #tpu.memory_space<vmem>>, %arg5: memref<1x128xf32, #tpu.memory_space<vmem>>, %arg6: memref<1x2x128xf32, #tpu.memory_space<vmem>>, %arg7: memref<1x2x128xf32, #tpu.memory_space<vmem>>, %arg8: memref<16x128xf32, #tpu.memory_space<vmem>>, %arg9: memref<2x128xf32, #tpu.memory_space<vmem>>) attributes {dimension_semantics = [#tpu.dimension_semantics<arbitrary>], iteration_bounds = array<i64: 25>, scalar_prefetch = 0 : i64, scratch_operands = 2 : i64, tpu.core_type = #tpu.core_type<tc>, window_params = [{transform_indices = @transform_0, window_bounds = array<i64: 4, 16, 400>}, {pipeline_mode = #tpu.pipeline_mode<synchronous>, transform_indices = @transform_1, window_bounds = array<i64: 400, 128>}, {pipeline_mode = #tpu.pipeline_mode<synchronous>, transform_indices = @transform_2, window_bounds = array<i64: 1, 128>}, {pipeline_mode = #tpu.pipeline_mode<synchronous>, transform_indices = @transform_3, window_bounds = array<i64: 8, 128, 128>}, {pipeline_mode = #tpu.pipeline_mode<synchronous>, transform_indices = @transform_4, window_bounds = array<i64: 1, 128>}, {transform_indices = @transform_5, window_bounds = array<i64: 1, 2, 128>}, {transform_indices = @transform_6, window_bounds = array<i64: 1, 2, 128>}]} {
    %c0_i32 = arith.constant 0 : i32
    %0 = arith.cmpi eq, %arg0, %c0_i32 : i32
    %1 = arith.extui %0 : i1 to i32
    %c0_i32_0 = arith.constant 0 : i32
    %2 = arith.cmpi ne, %1, %c0_i32_0 : i32
    scf.if %2 {
      %cst_58 = arith.constant 0.000000e+00 : f32
      %93 = vector.broadcast %cst_58 : f32 to vector<16x128xf32>
      %c0_59 = arith.constant 0 : index
      %c0_60 = arith.constant 0 : index
      %94 = vector.load %arg8[%c0_59, %c0_60] : memref<16x128xf32, #tpu.memory_space<vmem>>, vector<16x128xf32>
      tpu.vector_store %arg8[%c0_59, %c0_60], %93 {strides = array<i32>} : memref<16x128xf32, #tpu.memory_space<vmem>>, vector<16x128xf32>,
      %cst_61 = arith.constant 0.000000e+00 : f32
      %95 = vector.broadcast %cst_61 : f32 to vector<2x128xf32>
      %c0_62 = arith.constant 0 : index
      %c0_63 = arith.constant 0 : index
      %96 = vector.load %arg9[%c0_62, %c0_63] : memref<2x128xf32, #tpu.memory_space<vmem>>, vector<2x128xf32>
      tpu.vector_store %arg9[%c0_62, %c0_63], %95 {strides = array<i32>} : memref<2x128xf32, #tpu.memory_space<vmem>>, vector<2x128xf32>,
    } else {
    }
    %c0 = arith.constant 0 : index
    %c0_1 = arith.constant 0 : index
    %c0_2 = arith.constant 0 : index
    %3 = vector.load %arg1[%c0, %c0_1, %c0_2] : memref<4x16x400xbf16, #tpu.memory_space<vmem>>, vector<4x16x400xbf16>
    %4 = vector.shape_cast %3 : vector<4x16x400xbf16> to vector<64x400xbf16>
    %c0_3 = arith.constant 0 : index
    %c0_4 = arith.constant 0 : index
    %5 = vector.load %arg2[%c0_3, %c0_4] : memref<400x128xbf16, #tpu.memory_space<vmem>>, vector<400x128xbf16>
    %cst = arith.constant dense<0.000000e+00> : vector<64x128xf32>
    %6 = tpu.matmul %4, %5, %cst {dimension_numbers = #tpu.dot_dimension_numbers<[1], [0], [0], [1], [0, 0, 1, 1], [], []>} : vector<64x400xbf16>, vector<400x128xbf16>, vector<64x128xf32> -> vector<64x128xf32>
    %7 = vector.shape_cast %6 : vector<64x128xf32> to vector<4x16x128xf32>
    %cst_5 = arith.constant dense<0xFF800000> : vector<16x128xf32>
    %8 = vector.multi_reduction <maximumf>, %7, %cst_5 [0] : vector<4x16x128xf32> to vector<16x128xf32>
    %c0_6 = arith.constant 0 : index
    %c0_7 = arith.constant 0 : index
    %9 = vector.load %arg3[%c0_6, %c0_7] : memref<1x128xf32, #tpu.memory_space<vmem>>, vector<1x128xf32>
    %10 = vector.broadcast %9 : vector<1x128xf32> to vector<16x128xf32>
    %11 = arith.addf %8, %10 : vector<16x128xf32>
    %c0_8 = arith.constant 0 : index
    %c0_9 = arith.constant 0 : index
    %12 = vector.load %arg8[%c0_8, %c0_9] : memref<16x128xf32, #tpu.memory_space<vmem>>, vector<16x128xf32>
    %cst_10 = arith.constant 1.000000e+00 : f32
    %13 = vector.broadcast %cst_10 : f32 to vector<16x128xf32>
    %14 = arith.cmpf ogt, %12, %13 : vector<16x128xf32>
    %15 = arith.extui %14 : vector<16x128xi1> to vector<16x128xi32>
    %16 = arith.sitofp %15 : vector<16x128xi32> to vector<16x128xf32>
    %cst_11 = arith.constant 0.949999988 : f32
    %17 = vector.broadcast %cst_11 : f32 to vector<16x128xf32>
    %18 = arith.mulf %17, %12 : vector<16x128xf32>
    %19 = arith.addf %18, %11 : vector<16x128xf32>
    %cst_12 = arith.constant 1.000000e+00 : f32
    %20 = vector.broadcast %cst_12 : f32 to vector<16x128xf32>
    %21 = arith.mulf %16, %20 : vector<16x128xf32>
    %22 = arith.subf %19, %21 : vector<16x128xf32>
    %cst_13 = arith.constant 1.000000e+00 : f32
    %23 = vector.broadcast %cst_13 : f32 to vector<16x128xf32>
    %24 = arith.cmpf ogt, %22, %23 : vector<16x128xf32>
    %25 = arith.extui %24 : vector<16x128xi1> to vector<16x128xi32>
    %26 = arith.sitofp %25 : vector<16x128xi32> to vector<16x128xf32>
    %27 = arith.truncf %26 : vector<16x128xf32> to vector<16x128xbf16>
    %c0_14 = arith.constant 0 : index
    %c0_15 = arith.constant 0 : index
    %28 = vector.load %arg8[%c0_14, %c0_15] : memref<16x128xf32, #tpu.memory_space<vmem>>, vector<16x128xf32>
    tpu.vector_store %arg8[%c0_14, %c0_15], %22 {strides = array<i32>} : memref<16x128xf32, #tpu.memory_space<vmem>>, vector<16x128xf32>,
    %cst_16 = arith.constant 0.000000e+00 : f32
    %29 = vector.broadcast %cst_16 : f32 to vector<2x128xf32>
    %30 = vector.extract_strided_slice %27 {offsets = [0, 0], sizes = [2, 128], strides = [1, 1]} : vector<16x128xbf16> to vector<2x128xbf16>
    %c0_17 = arith.constant 0 : index
    %c0_18 = arith.constant 0 : index
    %c0_19 = arith.constant 0 : index
    %31 = vector.load %arg4[%c0_17, %c0_18, %c0_19] : memref<8x128x128xbf16, #tpu.memory_space<vmem>>, vector<1x128x128xbf16>
    %32 = vector.shape_cast %31 : vector<1x128x128xbf16> to vector<128x128xbf16>
    %cst_20 = arith.constant dense<0.000000e+00> : vector<2x128xf32>
    %33 = tpu.matmul %30, %32, %cst_20 {dimension_numbers = #tpu.dot_dimension_numbers<[1], [0], [0], [1], [0, 0, 1, 1], [], []>} : vector<2x128xbf16>, vector<128x128xbf16>, vector<2x128xf32> -> vector<2x128xf32>
    %34 = arith.addf %29, %33 : vector<2x128xf32>
    %35 = vector.extract_strided_slice %27 {offsets = [2, 0], sizes = [2, 128], strides = [1, 1]} : vector<16x128xbf16> to vector<2x128xbf16>
    %c1 = arith.constant 1 : index
    %c0_21 = arith.constant 0 : index
    %c0_22 = arith.constant 0 : index
    %36 = vector.load %arg4[%c1, %c0_21, %c0_22] : memref<8x128x128xbf16, #tpu.memory_space<vmem>>, vector<1x128x128xbf16>
    %37 = vector.shape_cast %36 : vector<1x128x128xbf16> to vector<128x128xbf16>
    %cst_23 = arith.constant dense<0.000000e+00> : vector<2x128xf32>
    %38 = tpu.matmul %35, %37, %cst_23 {dimension_numbers = #tpu.dot_dimension_numbers<[1], [0], [0], [1], [0, 0, 1, 1], [], []>} : vector<2x128xbf16>, vector<128x128xbf16>, vector<2x128xf32> -> vector<2x128xf32>
    %39 = arith.addf %34, %38 : vector<2x128xf32>
    %40 = vector.extract_strided_slice %27 {offsets = [4, 0], sizes = [2, 128], strides = [1, 1]} : vector<16x128xbf16> to vector<2x128xbf16>
    %c2 = arith.constant 2 : index
    %c0_24 = arith.constant 0 : index
    %c0_25 = arith.constant 0 : index
    %41 = vector.load %arg4[%c2, %c0_24, %c0_25] : memref<8x128x128xbf16, #tpu.memory_space<vmem>>, vector<1x128x128xbf16>
    %42 = vector.shape_cast %41 : vector<1x128x128xbf16> to vector<128x128xbf16>
    %cst_26 = arith.constant dense<0.000000e+00> : vector<2x128xf32>
    %43 = tpu.matmul %40, %42, %cst_26 {dimension_numbers = #tpu.dot_dimension_numbers<[1], [0], [0], [1], [0, 0, 1, 1], [], []>} : vector<2x128xbf16>, vector<128x128xbf16>, vector<2x128xf32> -> vector<2x128xf32>
    %44 = arith.addf %39, %43 : vector<2x128xf32>
    %45 = vector.extract_strided_slice %27 {offsets = [6, 0], sizes = [2, 128], strides = [1, 1]} : vector<16x128xbf16> to vector<2x128xbf16>
    %c3 = arith.constant 3 : index
    %c0_27 = arith.constant 0 : index
    %c0_28 = arith.constant 0 : index
    %46 = vector.load %arg4[%c3, %c0_27, %c0_28] : memref<8x128x128xbf16, #tpu.memory_space<vmem>>, vector<1x128x128xbf16>
    %47 = vector.shape_cast %46 : vector<1x128x128xbf16> to vector<128x128xbf16>
    %cst_29 = arith.constant dense<0.000000e+00> : vector<2x128xf32>
    %48 = tpu.matmul %45, %47, %cst_29 {dimension_numbers = #tpu.dot_dimension_numbers<[1], [0], [0], [1], [0, 0, 1, 1], [], []>} : vector<2x128xbf16>, vector<128x128xbf16>, vector<2x128xf32> -> vector<2x128xf32>
    %49 = arith.addf %44, %48 : vector<2x128xf32>
    %50 = vector.extract_strided_slice %27 {offsets = [8, 0], sizes = [2, 128], strides = [1, 1]} : vector<16x128xbf16> to vector<2x128xbf16>
    %c4 = arith.constant 4 : index
    %c0_30 = arith.constant 0 : index
    %c0_31 = arith.constant 0 : index
    %51 = vector.load %arg4[%c4, %c0_30, %c0_31] : memref<8x128x128xbf16, #tpu.memory_space<vmem>>, vector<1x128x128xbf16>
    %52 = vector.shape_cast %51 : vector<1x128x128xbf16> to vector<128x128xbf16>
    %cst_32 = arith.constant dense<0.000000e+00> : vector<2x128xf32>
    %53 = tpu.matmul %50, %52, %cst_32 {dimension_numbers = #tpu.dot_dimension_numbers<[1], [0], [0], [1], [0, 0, 1, 1], [], []>} : vector<2x128xbf16>, vector<128x128xbf16>, vector<2x128xf32> -> vector<2x128xf32>
    %54 = arith.addf %49, %53 : vector<2x128xf32>
    %55 = vector.extract_strided_slice %27 {offsets = [10, 0], sizes = [2, 128], strides = [1, 1]} : vector<16x128xbf16> to vector<2x128xbf16>
    %c5 = arith.constant 5 : index
    %c0_33 = arith.constant 0 : index
    %c0_34 = arith.constant 0 : index
    %56 = vector.load %arg4[%c5, %c0_33, %c0_34] : memref<8x128x128xbf16, #tpu.memory_space<vmem>>, vector<1x128x128xbf16>
    %57 = vector.shape_cast %56 : vector<1x128x128xbf16> to vector<128x128xbf16>
    %cst_35 = arith.constant dense<0.000000e+00> : vector<2x128xf32>
    %58 = tpu.matmul %55, %57, %cst_35 {dimension_numbers = #tpu.dot_dimension_numbers<[1], [0], [0], [1], [0, 0, 1, 1], [], []>} : vector<2x128xbf16>, vector<128x128xbf16>, vector<2x128xf32> -> vector<2x128xf32>
    %59 = arith.addf %54, %58 : vector<2x128xf32>
    %60 = vector.extract_strided_slice %27 {offsets = [12, 0], sizes = [2, 128], strides = [1, 1]} : vector<16x128xbf16> to vector<2x128xbf16>
    %c6 = arith.constant 6 : index
    %c0_36 = arith.constant 0 : index
    %c0_37 = arith.constant 0 : index
    %61 = vector.load %arg4[%c6, %c0_36, %c0_37] : memref<8x128x128xbf16, #tpu.memory_space<vmem>>, vector<1x128x128xbf16>
    %62 = vector.shape_cast %61 : vector<1x128x128xbf16> to vector<128x128xbf16>
    %cst_38 = arith.constant dense<0.000000e+00> : vector<2x128xf32>
    %63 = tpu.matmul %60, %62, %cst_38 {dimension_numbers = #tpu.dot_dimension_numbers<[1], [0], [0], [1], [0, 0, 1, 1], [], []>} : vector<2x128xbf16>, vector<128x128xbf16>, vector<2x128xf32> -> vector<2x128xf32>
    %64 = arith.addf %59, %63 : vector<2x128xf32>
    %65 = vector.extract_strided_slice %27 {offsets = [14, 0], sizes = [2, 128], strides = [1, 1]} : vector<16x128xbf16> to vector<2x128xbf16>
    %c7 = arith.constant 7 : index
    %c0_39 = arith.constant 0 : index
    %c0_40 = arith.constant 0 : index
    %66 = vector.load %arg4[%c7, %c0_39, %c0_40] : memref<8x128x128xbf16, #tpu.memory_space<vmem>>, vector<1x128x128xbf16>
    %67 = vector.shape_cast %66 : vector<1x128x128xbf16> to vector<128x128xbf16>
    %cst_41 = arith.constant dense<0.000000e+00> : vector<2x128xf32>
    %68 = tpu.matmul %65, %67, %cst_41 {dimension_numbers = #tpu.dot_dimension_numbers<[1], [0], [0], [1], [0, 0, 1, 1], [], []>} : vector<2x128xbf16>, vector<128x128xbf16>, vector<2x128xf32> -> vector<2x128xf32>
    %69 = arith.addf %64, %68 : vector<2x128xf32>
    %c0_42 = arith.constant 0 : index
    %c0_43 = arith.constant 0 : index
    %70 = vector.load %arg5[%c0_42, %c0_43] : memref<1x128xf32, #tpu.memory_space<vmem>>, vector<1x128xf32>
    %71 = vector.broadcast %70 : vector<1x128xf32> to vector<2x128xf32>
    %72 = arith.addf %69, %71 : vector<2x128xf32>
    %c0_44 = arith.constant 0 : index
    %c0_45 = arith.constant 0 : index
    %73 = vector.load %arg9[%c0_44, %c0_45] : memref<2x128xf32, #tpu.memory_space<vmem>>, vector<2x128xf32>
    %cst_46 = arith.constant 1.000000e+00 : f32
    %74 = vector.broadcast %cst_46 : f32 to vector<2x128xf32>
    %75 = arith.cmpf ogt, %73, %74 : vector<2x128xf32>
    %76 = arith.extui %75 : vector<2x128xi1> to vector<2x128xi32>
    %77 = arith.sitofp %76 : vector<2x128xi32> to vector<2x128xf32>
    %cst_47 = arith.constant 0.949999988 : f32
    %78 = vector.broadcast %cst_47 : f32 to vector<2x128xf32>
    %79 = arith.mulf %78, %73 : vector<2x128xf32>
    %80 = arith.addf %79, %72 : vector<2x128xf32>
    %cst_48 = arith.constant 1.000000e+00 : f32
    %81 = vector.broadcast %cst_48 : f32 to vector<2x128xf32>
    %82 = arith.mulf %77, %81 : vector<2x128xf32>
    %83 = arith.subf %80, %82 : vector<2x128xf32>
    %cst_49 = arith.constant 1.000000e+00 : f32
    %84 = vector.broadcast %cst_49 : f32 to vector<2x128xf32>
    %85 = arith.cmpf ogt, %83, %84 : vector<2x128xf32>
    %86 = arith.extui %85 : vector<2x128xi1> to vector<2x128xi32>
    %87 = arith.sitofp %86 : vector<2x128xi32> to vector<2x128xf32>
    %88 = vector.shape_cast %87 : vector<2x128xf32> to vector<1x2x128xf32>
    %c0_50 = arith.constant 0 : index
    %c0_51 = arith.constant 0 : index
    %c0_52 = arith.constant 0 : index
    %89 = vector.load %arg6[%c0_50, %c0_51, %c0_52] : memref<1x2x128xf32, #tpu.memory_space<vmem>>, vector<1x2x128xf32>
    tpu.vector_store %arg6[%c0_50, %c0_51, %c0_52], %88 {strides = array<i32>} : memref<1x2x128xf32, #tpu.memory_space<vmem>>, vector<1x2x128xf32>,
    %90 = vector.shape_cast %83 : vector<2x128xf32> to vector<1x2x128xf32>
    %c0_53 = arith.constant 0 : index
    %c0_54 = arith.constant 0 : index
    %c0_55 = arith.constant 0 : index
    %91 = vector.load %arg7[%c0_53, %c0_54, %c0_55] : memref<1x2x128xf32, #tpu.memory_space<vmem>>, vector<1x2x128xf32>
    tpu.vector_store %arg7[%c0_53, %c0_54, %c0_55], %90 {strides = array<i32>} : memref<1x2x128xf32, #tpu.memory_space<vmem>>, vector<1x2x128xf32>,
    %c0_56 = arith.constant 0 : index
    %c0_57 = arith.constant 0 : index
    %92 = vector.load %arg9[%c0_56, %c0_57] : memref<2x128xf32, #tpu.memory_space<vmem>>, vector<2x128xf32>
    tpu.vector_store %arg9[%c0_56, %c0_57], %83 {strides = array<i32>} : memref<2x128xf32, #tpu.memory_space<vmem>>, vector<2x128xf32>,
    return
  }
  func.func @transform_0(%arg0: i32) -> (i32, i32, i32) {
    %c0_i32 = arith.constant 0 : i32
    %c0_i32_0 = arith.constant 0 : i32
    %c0_i32_1 = arith.constant 0 : i32
    return %c0_i32, %arg0, %c0_i32_0 : i32, i32, i32
  }
  func.func @transform_1(%arg0: i32) -> (i32, i32) {
    %c0_i32 = arith.constant 0 : i32
    %c0_i32_0 = arith.constant 0 : i32
    %c0_i32_1 = arith.constant 0 : i32
    return %c0_i32, %c0_i32_0 : i32, i32
  }
  func.func @transform_2(%arg0: i32) -> (i32, i32) {
    %c0_i32 = arith.constant 0 : i32
    %c0_i32_0 = arith.constant 0 : i32
    %c0_i32_1 = arith.constant 0 : i32
    return %c0_i32, %c0_i32_0 : i32, i32
  }
  func.func @transform_3(%arg0: i32) -> (i32, i32, i32) {
    %c0_i32 = arith.constant 0 : i32
    %c0_i32_0 = arith.constant 0 : i32
    %c0_i32_1 = arith.constant 0 : i32
    %c0_i32_2 = arith.constant 0 : i32
    return %c0_i32, %c0_i32_0, %c0_i32_1 : i32, i32, i32
  }
  func.func @transform_4(%arg0: i32) -> (i32, i32) {
    %c0_i32 = arith.constant 0 : i32
    %c0_i32_0 = arith.constant 0 : i32
    %c0_i32_1 = arith.constant 0 : i32
    return %c0_i32, %c0_i32_0 : i32, i32
  }
  func.func @transform_5(%arg0: i32) -> (i32, i32, i32) {
    %c0_i32 = arith.constant 0 : i32
    %c0_i32_0 = arith.constant 0 : i32
    %c0_i32_1 = arith.constant 0 : i32
    return %arg0, %c0_i32, %c0_i32_0 : i32, i32, i32
  }
  func.func @transform_6(%arg0: i32) -> (i32, i32, i32) {
    %c0_i32 = arith.constant 0 : i32
    %c0_i32_0 = arith.constant 0 : i32
    %c0_i32_1 = arith.constant 0 : i32
    return %arg0, %c0_i32, %c0_i32_0 : i32, i32, i32
  }
}

</mosaic_0001>

<bundles_post_ra>
// kernel: net_forward.2
= control target key start
LH: loop header
LB: loop body
LE: loop exit
PB: predicated region body
PF: predicated region fallthrough
CT: control target
= control target key end

     0   :  { %s1518_s12 = smov 0   ;;  %s1520_s13 = smov 0   ;;  %s1769_s0 = inlined_call_operand.vmem [shape: bf16[4,4800,50], index: 0, kind: input, shape index: {}]   ;;  %s1770_s1 = inlined_call_operand.vmem [shape: bf16[50,128], index: 1, kind: input, shape index: {}]   ;;  %s1771_s2 = inlined_call_operand.vmem [shape: f32[1,128], index: 2, kind: input, shape index: {}]   ;;  %s1772_s3 = inlined_call_operand.vmem [shape: bf16[4800,128], index: 3, kind: output, shape index: {}]  }
   0x1   :  { %s1522_s14 = smov 0   ;;  %s1524_s15 = smov 0  }
   0x2   :  { %s1526_s16 = smov 0   ;;  %s1528_s17 = smov 0  }
   0x3   :  { %s1530_s18 = smov 0  }
   0x4 LB: > { %s22_s19 = sadd.s32 1, %s1486_s16  ;;  %s25_s20 = sadd.s32 1, %s1490_s17  ;;  %s1494_s18 = sphi %s1530_s18, %s13_s18   ;;  %s1490_s17 = sphi %s1528_s17, %s1778_s17   ;;  %s1486_s16 = sphi %s1526_s16, %s1777_s16   ;;  %s1482_s15 = sphi %s1524_s15, %s1776_s15   ;;  %s1478_s14 = sphi %s1522_s14, %s1775_s14   ;;  %s1474_s13 = sphi %s1520_s13, %s1774_s13   ;;  %s1470_s12 = sphi %s1518_s12, %s1773_s12  }
   0x5   : > { %p23_p0 = scmp.ge.s32.totalorder %s22_s19, 25  ;;  %s1146_s21 = sshll.u32 %s1486_s16, 1 }
   0x6   : > { %p43_p1 = scmp.ne.s32.totalorder %s1474_s13, %s1470_s12  ;;  %p44_p3 = scmp.eq.s32.totalorder %s1494_s18, 0 }
   0x7   : > { %s1780_s19 = smov (%p23_p0, %s22_s19), 0  ;;  %s1782_s20 = smov (!%p23_p0, %s25_s20), %s1490_s17 }
   0x8   : > { %p27_p2 = scmp.ge.s32.totalorder %s1782_s20, 2  ;;  %s30_s22 = sadd.s32 %s1490_s17, %s1146_s21 }
   0x9   : > { %s1147_s23 = sshll.u32 %s1780_s19, 1  ;;  %p45_p4 = por %p44_p3, %p43_p1 }
   0xa   : > { %s1784_s20 = smov (%p27_p2, %s1782_s20), 0  ;;  %s36_s26 = sadd.s32 1, %s1474_s13 }
   0xb   : > { %s32_s24 = sadd.s32 %s1147_s23, %s1784_s20  ;;  %p1151_p6 = scmp.ge.s32.totalorder %s1494_s18, 50 }
   0xc   : > { %s33_s25 = ssub.s32 %s30_s22, %s32_s24 }
   0xd   : > { %p34_p5 = scmp.eq.s32.totalorder %s33_s25, 0  ;;  %147 = sbr.rel (%p1151_p6) target bundleno = 47 (0x2f), region = 24 }
   0xf   : > { %s1569_s27 = scalar_select %p34_p5, %s1474_s13, %s36_s26  }
  0x12   : > { %150 = sbr.rel (!%p45_p4) target bundleno = 47 (0x2f), region = 28  ;;  %s152_s28 = sand.u32 (%p45_p4), 1, %s1474_s13  }
  0x13   : > { %s1316_s29 = smul.u32 (%p45_p4), 48, %s30_s22 }
  0x14   : > { %s1379_s30 = smul.u32 (%p45_p4), 192, %s152_s28 }
  0x15   : > { %s1576_s6 = scalar_lea.vmem (%p45_p4), %s1769_s0, %s1316_s29 }
  0x16   : > { %v176_v0 = vld [vmem:[%s1576_s6] sm:$0xff] (%p45_p4)   ;;  %v180_v1 = vld [vmem:[%s1576_s6 + $0x8] sm:$0xff] (%p45_p4)   ;;  %v184_v2 = vld [vmem:[%s1576_s6 + $0x10] sm:$0xff] (%p45_p4)   ;;  %s1581_s7 = scalar_lea.vmem (%p45_p4), [#allocation3], %s1379_s30 }
  0x17   : > { %177 = vst [vmem:[%s1581_s7] sm:$0xff] %v176_v0   ;;  %v188_v3 = vld [vmem:[%s1576_s6 + $0x18] sm:$0xff]   ;;  %v192_v4 = vld [vmem:[%s1576_s6 + $0x20] sm:$0xff]   ;;  %v196_v5 = vld [vmem:[%s1576_s6 + $0x28] sm:$0xff]  }
  0x18   : > { %181 = vst [vmem:[%s1581_s7 + $0x8] sm:$0xff] %v180_v1   ;;  %v200_v6 = vld [vmem:[%s1576_s6 + $0x960] sm:$0xff]   ;;  %v204_v7 = vld [vmem:[%s1576_s6 + $0x968] sm:$0xff]   ;;  %v208_v8 = vld [vmem:[%s1576_s6 + $0x970] sm:$0xff]  }
  0x19   : > { %185 = vst [vmem:[%s1581_s7 + $0x10] sm:$0xff] %v184_v2   ;;  %v212_v9 = vld [vmem:[%s1576_s6 + $0x978] sm:$0xff]   ;;  %v216_v10 = vld [vmem:[%s1576_s6 + $0x980] sm:$0xff]   ;;  %v220_v11 = vld [vmem:[%s1576_s6 + $0x988] sm:$0xff]  }
  0x1a   : > { %189 = vst [vmem:[%s1581_s7 + $0x18] sm:$0xff] %v188_v3   ;;  %v224_v12 = vld [vmem:[%s1576_s6 + $0x12c0] sm:$0xff]   ;;  %v228_v13 = vld [vmem:[%s1576_s6 + $0x12c8] sm:$0xff]   ;;  %v232_v14 = vld [vmem:[%s1576_s6 + $0x12d0] sm:$0xff]  }
  0x1b   : > { %193 = vst [vmem:[%s1581_s7 + $0x20] sm:$0xff] %v192_v4   ;;  %v236_v15 = vld [vmem:[%s1576_s6 + $0x12d8] sm:$0xff]   ;;  %v240_v16 = vld [vmem:[%s1576_s6 + $0x12e0] sm:$0xff]   ;;  %v244_v17 = vld [vmem:[%s1576_s6 + $0x12e8] sm:$0xff]  }
  0x1c   : > { %197 = vst [vmem:[%s1581_s7 + $0x28] sm:$0xff] %v196_v5   ;;  %v248_v18 = vld [vmem:[%s1576_s6 + $0x1c20] sm:$0xff]   ;;  %v252_v19 = vld [vmem:[%s1576_s6 + $0x1c28] sm:$0xff]   ;;  %v256_v20 = vld [vmem:[%s1576_s6 + $0x1c30] sm:$0xff]  }
  0x1d   : > { %201 = vst [vmem:[%s1581_s7 + $0x30] sm:$0xff] %v200_v6   ;;  %v260_v21 = vld [vmem:[%s1576_s6 + $0x1c38] sm:$0xff]   ;;  %v264_v22 = vld [vmem:[%s1576_s6 + $0x1c40] sm:$0xff]   ;;  %v268_v23 = vld [vmem:[%s1576_s6 + $0x1c48] sm:$0xff]  }
  0x1e   : > { %205 = vst [vmem:[%s1581_s7 + $0x38] sm:$0xff] %v204_v7  }
  0x1f   : > { %209 = vst [vmem:[%s1581_s7 + $0x40] sm:$0xff] %v208_v8  }
  0x20   : > { %213 = vst [vmem:[%s1581_s7 + $0x48] sm:$0xff] %v212_v9  }
  0x21   : > { %217 = vst [vmem:[%s1581_s7 + $0x50] sm:$0xff] %v216_v10  }
  0x22   : > { %221 = vst [vmem:[%s1581_s7 + $0x58] sm:$0xff] %v220_v11  }
  0x23   : > { %225 = vst [vmem:[%s1581_s7 + $0x60] sm:$0xff] %v224_v12  }
  0x24   : > { %229 = vst [vmem:[%s1581_s7 + $0x68] sm:$0xff] %v228_v13  }
  0x25   : > { %233 = vst [vmem:[%s1581_s7 + $0x70] sm:$0xff] %v232_v14  }
  0x26   : > { %237 = vst [vmem:[%s1581_s7 + $0x78] sm:$0xff] %v236_v15  }
  0x27   : > { %241 = vst [vmem:[%s1581_s7 + $0x80] sm:$0xff] %v240_v16  }
  0x28   : > { %245 = vst [vmem:[%s1581_s7 + $0x88] sm:$0xff] %v244_v17  }
  0x29   : > { %249 = vst [vmem:[%s1581_s7 + $0x90] sm:$0xff] %v248_v18  }
  0x2a   : > { %253 = vst [vmem:[%s1581_s7 + $0x98] sm:$0xff] %v252_v19  }
  0x2b   : > { %257 = vst [vmem:[%s1581_s7 + $0xa0] sm:$0xff] %v256_v20  }
  0x2c   : > { %261 = vst [vmem:[%s1581_s7 + $0xa8] sm:$0xff] %v260_v21  }
  0x2d   : > { %265 = vst [vmem:[%s1581_s7 + $0xb0] sm:$0xff] %v264_v22  }
  0x2e   : > { %269 = vst [vmem:[%s1581_s7 + $0xb8] sm:$0xff] %v268_v23  }
  0x2f PF: > { %p1154_p7 = scmp.ge.s32.totalorder %s1494_s18, 1  ;;  %p390_p8 = scmp.lt.s32.totalorder %s1494_s18, 51 }
  0x31   : > { %p391_p9 = pnand %p1154_p7, %p390_p8 }
  0x32   : > { %s397_s8 = sand.u32 (!%p391_p9), 1, %s1470_s12   ;;  %s1155_s9 = sshll.u32 (!%p391_p9), %s1478_s14, 1 }
  0x33   : > { %394 = sbr.rel (%p391_p9) target bundleno = 331 (0x14b), region = 69  ;;  %s426_s11 = sadd.s32 (!%p391_p9), %s1482_s15, %s1155_s9 }
  0x34   : > { %s1380_s10 = smul.u32 (!%p391_p9), 192, %s397_s8  ;;  %p1157_p11 = scmp.ne.s32.totalorder (!%p391_p9), %s1478_s14, 0 }
  0x35   : > { %s427_s21 = smul.u32 (!%p391_p9), 12, %s426_s11 }
  0x36   : > { %s1638_s26 = scalar_lea.vmem (!%p391_p9), [#allocation3], %s1380_s10 }
  0x37   : > { %p428_p10 = scmp.lt.s32.totalorder (!%p391_p9), %s427_s21, 599 }
  0x38   : > { %439 = sbr.rel (%p1157_p11) target bundleno = 74 (0x4a), region = 77 }
  0x39   : > { %s1786_s21 = smov (!%p428_p10, %s427_s21), 599 }
  0x3a   : > { %s1156_s22 = sshll.u32 %s1786_s21, 2 }
  0x3b   : > { %s1636_s25 = scalar_lea.vmem %s1772_s3, %s1156_s22 }
  0x3d   : > { %v1496_v24 = vmov 0.0  }
  0x3e   : > { %440 = vst [vmem:[#allocation2 + $0x30] sm:$0xff] %v1496_v24 }
  0x3f   : > { %441 = vst [vmem:[#allocation2] sm:$0xff] %v1496_v24 }
  0x40   : > { %442 = vst [vmem:[#allocation2 + $0x58] sm:$0xff] %v1496_v24 }
  0x41   : > { %443 = vst [vmem:[#allocation2 + $0x18] sm:$0xff] %v1496_v24 }
  0x42   : > { %444 = vst [vmem:[#allocation2 + $0x50] sm:$0xff] %v1496_v24 }
  0x43   : > { %445 = vst [vmem:[#allocation2 + $0x20] sm:$0xff] %v1496_v24 }
  0x44   : > { %446 = vst [vmem:[#allocation2 + $0x8] sm:$0xff] %v1496_v24 }
  0x45   : > { %447 = vst [vmem:[#allocation2 + $0x38] sm:$0xff] %v1496_v24 }
  0x46   : > { %448 = vst [vmem:[#allocation2 + $0x28] sm:$0xff] %v1496_v24 }
  0x47   : > { %449 = vst [vmem:[#allocation2 + $0x48] sm:$0xff] %v1496_v24 }
  0x48   : > { %450 = vst [vmem:[#allocation2 + $0x10] sm:$0xff] %v1496_v24 }
  0x49   : > { %451 = vst [vmem:[#allocation2 + $0x40] sm:$0xff] %v1496_v24 }
  0x4a PF: > { %v506_v25 = vld [vmem:[%s1770_s1 + $0x18] sm:$0x1]  ;;  %vm721_vm0 = vcmask 1040384   ;;  %v1343_v29 = vld [vmem:[%s1770_s1 + $0x10] sm:$0xff]  ;;  %v1342_v30 = vld [vmem:[%s1770_s1 + $0x8] sm:$0xff]  ;;  %vm648_vm1 = vcmask 408576  }
  0x4b   : > { %v640_v26 = vunpack.c.l.b16 %v506_v25  ;;  %v1341_v31 = vld [vmem:[%s1770_s1] sm:$0xff]  ;;  %v1323_v33 = vld [vmem:[%s1638_s26 + $0x30] sm:$0xff]  ;;  %v1318_v36 = vld [vmem:[%s1638_s26 + $0x8] sm:$0xff]  ;;  %v1497_v5 = vmov 0.0  }
  0x4c   : > { %v1317_v32 = vld [vmem:[%s1638_s26] sm:$0xff]  ;;  %v1335_v35 = vld [vmem:[%s1638_s26 + $0x90] sm:$0xff]  ;;  %v1324_v37 = vld [vmem:[%s1638_s26 + $0x38] sm:$0xff] }
  0x4d   : > { %v644_v27 = vpack.c.b16 %v640_v26, %v640_v26  ;;  %v1329_v34 = vld [vmem:[%s1638_s26 + $0x60] sm:$0xff]  ;;  %v1330_v38 = vld [vmem:[%s1638_s26 + $0x68] sm:$0xff]  ;;  %v1336_v39 = vld [vmem:[%s1638_s26 + $0x98] sm:$0xff] }
  0x4e   : > { %v1319_v40 = vld [vmem:[%s1638_s26 + $0x10] sm:$0xff]  ;;  %v1325_v41 = vld [vmem:[%s1638_s26 + $0x40] sm:$0xff]  ;;  %v1320_v44 = vld [vmem:[%s1638_s26 + $0x18] sm:$0xff] }
  0x4f   : > { %v723_v28 = vsel %vm721_vm0, %v644_v27, 0  ;;  %v1331_v42 = vld [vmem:[%s1638_s26 + $0x70] sm:$0xff]  ;;  %v1337_v43 = vld [vmem:[%s1638_s26 + $0xa0] sm:$0xff]  ;;  %v1326_v45 = vld [vmem:[%s1638_s26 + $0x48] sm:$0xff] }
  0x50   : > { %729 = vmatpush.bf16.msra.mxu0 %v723_v28  ;;  %1367 = vmatpush.bf16.msra.mxu1 %v723_v28  ;;  %v1332_v46 = vld [vmem:[%s1638_s26 + $0x78] sm:$0xff]  ;;  %v1338_v47 = vld [vmem:[%s1638_s26 + $0xa8] sm:$0xff]  ;;  %v1321_v48 = vld [vmem:[%s1638_s26 + $0x20] sm:$0xff] }
  0x51   : > { %1368 = vmatpush.bf16.msra.mxu2 %v723_v28  ;;  %1369 = vmatpush.bf16.msra.mxu3 %v723_v28  ;;  %v1327_v49 = vld [vmem:[%s1638_s26 + $0x50] sm:$0xff]  ;;  %v1333_v50 = vld [vmem:[%s1638_s26 + $0x80] sm:$0xff]  ;;  %v1322_v52 = vld [vmem:[%s1638_s26 + $0x28] sm:$0xff] }
  0x52   : > { %v1339_v51 = vld [vmem:[%s1638_s26 + $0xb0] sm:$0xff]  ;;  %v1328_v53 = vld [vmem:[%s1638_s26 + $0x58] sm:$0xff]  ;;  %v1334_v54 = vld [vmem:[%s1638_s26 + $0x88] sm:$0xff] }
  0x53   : > { %v1340_v55 = vld [vmem:[%s1638_s26 + $0xb8] sm:$0xff]  ;;  %v906_v61 = vld [vmem:[#allocation2 + $0x30] sm:$0xff]  ;;  %v1704_v63 = vld [vmem:[%s1771_s2] ss:$0 sm:$0xff] }
  0x54   : > { %730 = vmatpush.bf16.msra.mxu0 %v1343_v29  ;;  %1370 = vmatpush.bf16.msra.mxu1 %v1343_v29  ;;  %vm918_vm2 = vcmp.gt.f32.partialorder %v906_v61, 1.0  ;;  %v954_v3 = vmul.f32 0.95, %v906_v61  ;;  %v907_v11 = vld [vmem:[#allocation2] sm:$0xff]  ;;  %v908_v24 = vld [vmem:[#allocation2 + $0x58] sm:$0xff] }
  0x55   : > { %1371 = vmatpush.bf16.msra.mxu2 %v1343_v29  ;;  %1372 = vmatpush.bf16.msra.mxu3 %v1343_v29  ;;  %v1290_v6 = vsel %vm918_vm2, 1.0, %v1497_v5  ;;  %vm919_vm3 = vcmp.gt.f32.partialorder %v907_v11, 1.0  ;;  %v955_v17 = vmul.f32 0.95, %v907_v11  ;;  %vm920_vm6 = vcmp.gt.f32.partialorder %v908_v24, 1.0 }
  0x56   : > { %v1291_v20 = vsel %vm919_vm3, 1.0, %v1497_v5 }
  0x58   : > { %731 = vmatpush.bf16.msra.mxu0 %v1342_v30  ;;  %1373 = vmatpush.bf16.msra.mxu1 %v1342_v30 }
  0x59   : > { %1374 = vmatpush.bf16.msra.mxu2 %v1342_v30  ;;  %1375 = vmatpush.bf16.msra.mxu3 %v1342_v30  ;;  %v956_v30 = vmul.f32 0.95, %v908_v24 }
  0x5c   : > { %732 = vmatpush.bf16.msra.mxu0 %v1341_v31  ;;  %1376 = vmatpush.bf16.msra.mxu1 %v1341_v31 }
  0x5d   : > { %1377 = vmatpush.bf16.msra.mxu2 %v1341_v31  ;;  %1378 = vmatpush.bf16.msra.mxu3 %v1341_v31 }
  0x5f   : > { %1266 = vmatmul.msk.bf16.vlgmr.msra.gmra.mxu0 %vm648_vm1, %v1317_v32  ;;  %1272 = vmatmul.msk.bf16.vlgmr.msra.gmra.mxu1 %vm648_vm1, %v1323_v33 }
  0x60   : > { %1278 = vmatmul.msk.bf16.vlgmr.msra.gmra.mxu2 %vm648_vm1, %v1329_v34  ;;  %1284 = vmatmul.msk.bf16.vlgmr.msra.gmra.mxu3 %vm648_vm1, %v1335_v35  ;;  %v1292_v35 = vsel %vm920_vm6, 1.0, %v1497_v5 }
  0x6f   : > { %1267 = vmatmul.msk.bf16.gmra.mxu0 %vm648_vm1, %v1318_v36  ;;  %1273 = vmatmul.msk.bf16.gmra.mxu1 %vm648_vm1, %v1324_v37 }
  0x70   : > { %1279 = vmatmul.msk.bf16.gmra.mxu2 %vm648_vm1, %v1330_v38  ;;  %1285 = vmatmul.msk.bf16.gmra.mxu3 %vm648_vm1, %v1336_v39 }
  0x7f   : > { %1268 = vmatmul.msk.bf16.gmra.mxu0 %vm648_vm1, %v1319_v40  ;;  %1274 = vmatmul.msk.bf16.gmra.mxu1 %vm648_vm1, %v1325_v41  ;;  %v909_v40 = vld [vmem:[#allocation2 + $0x18] sm:$0xff] }
  0x80   : > { %1280 = vmatmul.msk.bf16.gmra.mxu2 %vm648_vm1, %v1331_v42  ;;  %1286 = vmatmul.msk.bf16.gmra.mxu3 %vm648_vm1, %v1337_v43  ;;  %vm921_vm7 = vcmp.gt.f32.partialorder %v909_v40, 1.0 }
  0x8f   : > { %1269 = vmatmul.msk.bf16.gmra.mxu0 %vm648_vm1, %v1320_v44  ;;  %1275 = vmatmul.msk.bf16.gmra.mxu1 %vm648_vm1, %v1326_v45 }
  0x90   : > { %1281 = vmatmul.msk.bf16.gmra.mxu2 %vm648_vm1, %v1332_v46  ;;  %1287 = vmatmul.msk.bf16.gmra.mxu3 %vm648_vm1, %v1338_v47  ;;  %v957_v46 = vmul.f32 0.95, %v909_v40 }
  0x9f   : > { %1270 = vmatmul.msk.bf16.gmra.mxu0 %vm648_vm1, %v1321_v48  ;;  %1276 = vmatmul.msk.bf16.gmra.mxu1 %vm648_vm1, %v1327_v49  ;;  %v1293_v49 = vsel %vm921_vm7, 1.0, %v1497_v5 }
  0xa0   : > { %1282 = vmatmul.msk.bf16.gmra.mxu2 %vm648_vm1, %v1333_v50  ;;  %1288 = vmatmul.msk.bf16.gmra.mxu3 %vm648_vm1, %v1339_v51 }
  0xaf   : > { %1271 = vmatmul.msk.bf16.gmra.mxu0 %vm648_vm1, %v1322_v52  ;;  %1277 = vmatmul.msk.bf16.gmra.mxu1 %vm648_vm1, %v1328_v53  ;;  %v910_v53 = vld [vmem:[#allocation2 + $0x50] sm:$0xff] }
  0xb0   : > { %1283 = vmatmul.msk.bf16.gmra.mxu2 %vm648_vm1, %v1334_v54  ;;  %1289 = vmatmul.msk.bf16.gmra.mxu3 %vm648_vm1, %v1340_v55  ;;  %vm922_vm10 = vcmp.gt.f32.partialorder %v910_v53, 1.0 }
  0xdc   : > { %v734_v56 = vpop.f32.mrf.mxu0  ;;  %v764_v57 = vpop.f32.mrf.mxu1 }
  0xdd   : > { %v854_v58 = vmax.f32 %v734_v56, %v764_v57 }
  0xe3   : > { %v794_v59 = vpop.f32.mrf.mxu2  ;;  %v824_v60 = vpop.f32.mrf.mxu3 }
  0xe4   : > { %v855_v62 = vmax.f32 %v854_v58, %v794_v59  ;;  %v736_v0 = vpop.f32.mrf.mxu0  ;;  %v766_v1 = vpop.f32.mrf.mxu1  ;;  %v958_v59 = vmul.f32 0.95, %v910_v53 }
  0xe5   : > { %v857_v8 = vmax.f32 %v736_v0, %v766_v1  ;;  %v1294_v1 = vsel %vm922_vm10, 1.0, %v1497_v5 }
  0xe6   : > { %v856_v2 = vmax.f32 %v855_v62, %v824_v60 }
  0xe8   : > { %v894_v4 = vadd.f32 %v1704_v63, %v856_v2 }
  0xea   : > { %v966_v7 = vadd.f32 %v954_v3, %v894_v4 }
  0xeb   : > { %v796_v9 = vpop.f32.mrf.mxu2  ;;  %v826_v10 = vpop.f32.mrf.mxu3 }
  0xec   : > { %v978_v12 = vsub.f32 %v966_v7, %v1290_v6  ;;  %v858_v13 = vmax.f32 %v857_v8, %v796_v9  ;;  %v739_v14 = vpop.f32.mrf.mxu0  ;;  %v769_v15 = vpop.f32.mrf.mxu1  ;;  %v911_v7 = vld [vmem:[#allocation2 + $0x20] sm:$0xff] }
  0xed   : > { %v860_v19 = vmax.f32 %v739_v14, %v769_v15  ;;  %vm923_vm11 = vcmp.gt.f32.partialorder %v911_v7, 1.0 }
  0xee   : > { %1050 = vst [vmem:[#allocation2 + $0x30] sm:$0xff] %v978_v12  ;;  %v859_v16 = vmax.f32 %v858_v13, %v826_v10  ;;  %vm990_vm4 = vcmp.gt.f32.partialorder %v978_v12, 1.0  ;;  %v959_v13 = vmul.f32 0.95, %v911_v7 }
  0xef   : > { %v1302_v31 = vsel %vm990_vm4, 1.0, %v1497_v5 }
  0xf0   : > { %v895_v18 = vadd.f32 %v1704_v63, %v859_v16  ;;  %v1295_v16 = vsel %vm923_vm11, 1.0, %v1497_v5 }
  0xf2   : > { %v967_v21 = vadd.f32 %v955_v17, %v895_v18 }
  0xf3   : > { %v799_v22 = vpop.f32.mrf.mxu2  ;;  %v829_v23 = vpop.f32.mrf.mxu3 }
  0xf4   : > { %v979_v25 = vsub.f32 %v967_v21, %v1291_v20  ;;  %v861_v26 = vmax.f32 %v860_v19, %v799_v22  ;;  %v741_v27 = vpop.f32.mrf.mxu0  ;;  %v771_v28 = vpop.f32.mrf.mxu1  ;;  %v912_v20 = vld [vmem:[#allocation2 + $0x8] sm:$0xff] }
  0xf5   : > { %v863_v37 = vmax.f32 %v741_v27, %v771_v28  ;;  %vm924_vm14 = vcmp.gt.f32.partialorder %v912_v20, 1.0 }
  0xf6   : > { %vm991_vm5 = vcmp.gt.f32.partialorder %v979_v25, 1.0  ;;  %1051 = vst [vmem:[#allocation2] sm:$0xff] %v979_v25  ;;  %v862_v29 = vmax.f32 %v861_v26, %v829_v23  ;;  %v960_v26 = vmul.f32 0.95, %v912_v20 }
  0xf7   : > { %v1303_v32 = vsel %vm991_vm5, 1.0, %v1497_v5 }
  0xf8   : > { %v1345_v33 = vpack.c.bf16 %v1303_v32, %v1302_v31  ;;  %v896_v34 = vadd.f32 %v1704_v63, %v862_v29  ;;  %v1296_v31 = vsel %vm924_vm14, 1.0, %v1497_v5 }
  0xfa   : > { %1346 = vst [vmem:[%s1636_s25] sm:$0xff] %v1345_v33   ;;  %v968_v36 = vadd.f32 %v956_v30, %v896_v34 }
  0xfb   : > { %v801_v38 = vpop.f32.mrf.mxu2  ;;  %v831_v39 = vpop.f32.mrf.mxu3 }
  0xfc   : > { %v980_v41 = vsub.f32 %v968_v36, %v1292_v35  ;;  %v864_v42 = vmax.f32 %v863_v37, %v801_v38  ;;  %v744_v43 = vpop.f32.mrf.mxu0  ;;  %v774_v44 = vpop.f32.mrf.mxu1  ;;  %v913_v36 = vld [vmem:[#allocation2 + $0x38] sm:$0xff] }
  0xfd   : > { %v866_v48 = vmax.f32 %v744_v43, %v774_v44  ;;  %vm925_vm15 = vcmp.gt.f32.partialorder %v913_v36, 1.0 }
  0xfe   : > { %1052 = vst [vmem:[#allocation2 + $0x58] sm:$0xff] %v980_v41  ;;  %v865_v45 = vmax.f32 %v864_v42, %v831_v39  ;;  %vm992_vm8 = vcmp.gt.f32.partialorder %v980_v41, 1.0  ;;  %v961_v42 = vmul.f32 0.95, %v913_v36 }
  0xff   : > { %v1304_v60 = vsel %vm992_vm8, 1.0, %v1497_v5 }
 0x100   : > { %v897_v47 = vadd.f32 %v1704_v63, %v865_v45  ;;  %v1297_v45 = vsel %vm925_vm15, 1.0, %v1497_v5 }
 0x102   : > { %v969_v50 = vadd.f32 %v957_v46, %v897_v47 }
 0x103   : > { %v804_v51 = vpop.f32.mrf.mxu2  ;;  %v834_v52 = vpop.f32.mrf.mxu3 }
 0x104   : > { %v981_v54 = vsub.f32 %v969_v50, %v1293_v49  ;;  %v867_v55 = vmax.f32 %v866_v48, %v804_v51  ;;  %v746_v56 = vpop.f32.mrf.mxu0  ;;  %v776_v57 = vpop.f32.mrf.mxu1  ;;  %v914_v49 = vld [vmem:[#allocation2 + $0x28] sm:$0xff] }
 0x105   : > { %v869_v3 = vmax.f32 %v746_v56, %v776_v57  ;;  %vm926_vm2 = vcmp.gt.f32.partialorder %v914_v49, 1.0 }
 0x106   : > { %vm993_vm9 = vcmp.gt.f32.partialorder %v981_v54, 1.0  ;;  %1053 = vst [vmem:[#allocation2 + $0x18] sm:$0xff] %v981_v54  ;;  %v868_v58 = vmax.f32 %v867_v55, %v834_v52  ;;  %v962_v55 = vmul.f32 0.95, %v914_v49 }
 0x107   : > { %v1305_v61 = vsel %vm993_vm9, 1.0, %v1497_v5 }
 0x108   : > { %v1348_v62 = vpack.c.bf16 %v1305_v61, %v1304_v60  ;;  %v898_v0 = vadd.f32 %v1704_v63, %v868_v58  ;;  %v1298_v60 = vsel %vm926_vm2, 1.0, %v1497_v5 }
 0x10a   : > { %1362 = vst [vmem:[%s1636_s25 + $0x8] sm:$0xff] %v1348_v62   ;;  %v970_v2 = vadd.f32 %v958_v59, %v898_v0 }
 0x10b   : > { %v806_v4 = vpop.f32.mrf.mxu2  ;;  %v836_v6 = vpop.f32.mrf.mxu3 }
 0x10c   : > { %v982_v8 = vsub.f32 %v970_v2, %v1294_v1  ;;  %v870_v9 = vmax.f32 %v869_v3, %v806_v4  ;;  %v749_v10 = vpop.f32.mrf.mxu0  ;;  %v779_v11 = vpop.f32.mrf.mxu1  ;;  %v915_v2 = vld [vmem:[#allocation2 + $0x48] sm:$0xff] }
 0x10d   : > { %v872_v15 = vmax.f32 %v749_v10, %v779_v11  ;;  %vm927_vm3 = vcmp.gt.f32.partialorder %v915_v2, 1.0 }
 0x10e   : > { %1054 = vst [vmem:[#allocation2 + $0x50] sm:$0xff] %v982_v8  ;;  %v871_v12 = vmax.f32 %v870_v9, %v836_v6  ;;  %vm994_vm12 = vcmp.gt.f32.partialorder %v982_v8, 1.0  ;;  %v963_v9 = vmul.f32 0.95, %v915_v2 }
 0x10f   : > { %v1306_v27 = vsel %vm994_vm12, 1.0, %v1497_v5 }
 0x110   : > { %v899_v14 = vadd.f32 %v1704_v63, %v871_v12  ;;  %v1299_v12 = vsel %vm927_vm3, 1.0, %v1497_v5 }
 0x112   : > { %v971_v17 = vadd.f32 %v959_v13, %v899_v14 }
 0x113   : > { %v809_v18 = vpop.f32.mrf.mxu2  ;;  %v839_v19 = vpop.f32.mrf.mxu3 }
 0x114   : > { %v983_v21 = vsub.f32 %v971_v17, %v1295_v16  ;;  %v873_v22 = vmax.f32 %v872_v15, %v809_v18  ;;  %v751_v23 = vpop.f32.mrf.mxu0  ;;  %v781_v24 = vpop.f32.mrf.mxu1  ;;  %v916_v16 = vld [vmem:[#allocation2 + $0x10] sm:$0xff] }
 0x115   : > { %v875_v33 = vmax.f32 %v751_v23, %v781_v24  ;;  %vm928_vm6 = vcmp.gt.f32.partialorder %v916_v16, 1.0  ;;  %v964_v20 = vmul.f32 0.95, %v916_v16 }
 0x116   : > { %vm995_vm13 = vcmp.gt.f32.partialorder %v983_v21, 1.0  ;;  %1055 = vst [vmem:[#allocation2 + $0x20] sm:$0xff] %v983_v21  ;;  %v874_v25 = vmax.f32 %v873_v22, %v839_v19 }
 0x117   : > { %v1307_v28 = vsel %vm995_vm13, 1.0, %v1497_v5 }
 0x118   : > { %v1351_v29 = vpack.c.bf16 %v1307_v28, %v1306_v27  ;;  %v900_v30 = vadd.f32 %v1704_v63, %v874_v25  ;;  %v1300_v27 = vsel %vm928_vm6, 1.0, %v1497_v5 }
 0x11a   : > { %1363 = vst [vmem:[%s1636_s25 + $0x10] sm:$0xff] %v1351_v29   ;;  %v972_v32 = vadd.f32 %v960_v26, %v900_v30 }
 0x11b   : > { %v811_v34 = vpop.f32.mrf.mxu2  ;;  %v841_v35 = vpop.f32.mrf.mxu3 }
 0x11c   : > { %v984_v37 = vsub.f32 %v972_v32, %v1296_v31  ;;  %v876_v38 = vmax.f32 %v875_v33, %v811_v34  ;;  %v754_v39 = vpop.f32.mrf.mxu0  ;;  %v784_v40 = vpop.f32.mrf.mxu1  ;;  %v917_v31 = vld [vmem:[#allocation2 + $0x40] sm:$0xff] }
 0x11d   : > { %v878_v44 = vmax.f32 %v754_v39, %v784_v40  ;;  %vm929_vm7 = vcmp.gt.f32.partialorder %v917_v31, 1.0  ;;  %v965_v36 = vmul.f32 0.95, %v917_v31 }
 0x11e   : > { %1056 = vst [vmem:[#allocation2 + $0x8] sm:$0xff] %v984_v37  ;;  %v877_v41 = vmax.f32 %v876_v38, %v841_v35  ;;  %vm996_vm0 = vcmp.gt.f32.partialorder %v984_v37, 1.0  ;;  %v1301_v38 = vsel %vm929_vm7, 1.0, %v1497_v5 }
 0x11f   : > { %v1308_v56 = vsel %vm996_vm0, 1.0, %v1497_v5 }
 0x120   : > { %v901_v43 = vadd.f32 %v1704_v63, %v877_v41 }
 0x122   : > { %v973_v46 = vadd.f32 %v961_v42, %v901_v43 }
 0x123   : > { %v814_v47 = vpop.f32.mrf.mxu2  ;;  %v844_v48 = vpop.f32.mrf.mxu3 }
 0x124   : > { %v985_v50 = vsub.f32 %v973_v46, %v1297_v45  ;;  %v879_v51 = vmax.f32 %v878_v44, %v814_v47  ;;  %v756_v52 = vpop.f32.mrf.mxu0  ;;  %v786_v53 = vpop.f32.mrf.mxu1 }
 0x125   : > { %v881_v62 = vmax.f32 %v756_v52, %v786_v53 }
 0x126   : > { %vm997_vm1 = vcmp.gt.f32.partialorder %v985_v50, 1.0  ;;  %1057 = vst [vmem:[#allocation2 + $0x38] sm:$0xff] %v985_v50  ;;  %v880_v54 = vmax.f32 %v879_v51, %v844_v48 }
 0x127   : > { %v1309_v57 = vsel %vm997_vm1, 1.0, %v1497_v5 }
 0x128   : > { %v1354_v58 = vpack.c.bf16 %v1309_v57, %v1308_v56  ;;  %v902_v59 = vadd.f32 %v1704_v63, %v880_v54 }
 0x12a   : > { %1364 = vst [vmem:[%s1636_s25 + $0x18] sm:$0xff] %v1354_v58   ;;  %v974_v61 = vadd.f32 %v962_v55, %v902_v59 }
 0x12b   : > { %v816_v0 = vpop.f32.mrf.mxu2  ;;  %v846_v1 = vpop.f32.mrf.mxu3 }
 0x12c   : > { %v986_v3 = vsub.f32 %v974_v61, %v1298_v60  ;;  %v882_v4 = vmax.f32 %v881_v62, %v816_v0  ;;  %v759_v6 = vpop.f32.mrf.mxu0  ;;  %v789_v7 = vpop.f32.mrf.mxu1 }
 0x12d   : > { %v884_v11 = vmax.f32 %v759_v6, %v789_v7 }
 0x12e   : > { %1058 = vst [vmem:[#allocation2 + $0x28] sm:$0xff] %v986_v3  ;;  %v883_v8 = vmax.f32 %v882_v4, %v846_v1  ;;  %vm998_vm4 = vcmp.gt.f32.partialorder %v986_v3, 1.0 }
 0x12f   : > { %v1310_v21 = vsel %vm998_vm4, 1.0, %v1497_v5 }
 0x130   : > { %v903_v10 = vadd.f32 %v1704_v63, %v883_v8 }
 0x132   : > { %v975_v13 = vadd.f32 %v963_v9, %v903_v10 }
 0x133   : > { %v819_v14 = vpop.f32.mrf.mxu2  ;;  %v849_v15 = vpop.f32.mrf.mxu3 }
 0x134   : > { %v987_v17 = vsub.f32 %v975_v13, %v1299_v12  ;;  %v885_v18 = vmax.f32 %v884_v11, %v819_v14  ;;  %v761_v23 = vpop.f32.mrf.mxu0  ;;  %v791_v24 = vpop.f32.mrf.mxu1 }
 0x135   : > { %v887_v29 = vmax.f32 %v761_v23, %v791_v24 }
 0x136   : > { %vm999_vm5 = vcmp.gt.f32.partialorder %v987_v17, 1.0  ;;  %1059 = vst [vmem:[#allocation2 + $0x48] sm:$0xff] %v987_v17  ;;  %v886_v19 = vmax.f32 %v885_v18, %v849_v15 }
 0x137   : > { %v1311_v22 = vsel %vm999_vm5, 1.0, %v1497_v5 }
 0x138   : > { %v1357_v25 = vpack.c.bf16 %v1311_v22, %v1310_v21  ;;  %v904_v26 = vadd.f32 %v1704_v63, %v886_v19 }
 0x13a   : > { %1365 = vst [vmem:[%s1636_s25 + $0x20] sm:$0xff] %v1357_v25   ;;  %v976_v28 = vadd.f32 %v964_v20, %v904_v26 }
 0x13b   : > { %v821_v30 = vpop.f32.mrf.mxu2  ;;  %v851_v34 = vpop.f32.mrf.mxu3 }
 0x13c   : > { %v988_v32 = vsub.f32 %v976_v28, %v1300_v27  ;;  %v888_v33 = vmax.f32 %v887_v29, %v821_v30 }
 0x13e   : > { %1060 = vst [vmem:[#allocation2 + $0x10] sm:$0xff] %v988_v32  ;;  %v889_v35 = vmax.f32 %v888_v33, %v851_v34  ;;  %vm1000_vm8 = vcmp.gt.f32.partialorder %v988_v32, 1.0 }
 0x13f   : > { %v1312_v41 = vsel %vm1000_vm8, 1.0, %v1497_v5 }
 0x140   : > { %v905_v37 = vadd.f32 %v1704_v63, %v889_v35 }
 0x142   : > { %v977_v39 = vadd.f32 %v965_v36, %v905_v37 }
 0x144   : > { %v989_v40 = vsub.f32 %v977_v39, %v1301_v38 }
 0x146   : > { %vm1001_vm9 = vcmp.gt.f32.partialorder %v989_v40, 1.0  ;;  %1061 = vst [vmem:[#allocation2 + $0x40] sm:$0xff] %v989_v40 }
 0x147   : > { %v1313_v42 = vsel %vm1001_vm9, 1.0, %v1497_v5 }
 0x148   : > { %v1360_v43 = vpack.c.bf16 %v1313_v42, %v1312_v41 }
 0x14a   : > { %1366 = vst [vmem:[%s1636_s25 + $0x28] sm:$0xff] %v1360_v43  }
 0x14b PF: > { %s13_s18 = sadd.s32 1, %s1494_s18   ;;  %s1773_s12 = smov %s1474_s13 }
 0x14c   : > { %p10_p12 = scmp.ge.s32.totalorder %s13_s18, 52   ;;  %s1774_s13 = smov %s1569_s27 }
 0x14d   : > { %s1775_s14 = smov %s1486_s16  ;;  %s1776_s15 = smov %s1490_s17 }
 0x14e   : > { %s1777_s16 = smov %s1780_s19  ;;  %s1778_s17 = smov %s1784_s20 }
 0x14f   :  { %12 = sbr.rel (!%p10_p12) target bundleno = 4 (0x4), region = 112 }

// kernel: net_forward.3
= control target key start
LH: loop header
LB: loop body
LE: loop exit
PB: predicated region body
PF: predicated region fallthrough
CT: control target
= control target key end

     0   :  { %s2292_s21 = smov 0   ;;  %s2294_s22 = smov 0   ;;  %s2742_s0 = inlined_call_operand.vmem [shape: bf16[4,400,400], index: 0, kind: input, shape index: {}]   ;;  %s2743_s1 = inlined_call_operand.vmem [shape: bf16[400,128], index: 1, kind: input, shape index: {}]   ;;  %s2744_s2 = inlined_call_operand.vmem [shape: f32[1,128], index: 2, kind: input, shape index: {}]   ;;  %s2745_s3 = inlined_call_operand.vmem [shape: bf16[8,128,128], index: 3, kind: input, shape index: {}]   ;;  %s2746_s4 = inlined_call_operand.vmem [shape: f32[1,128], index: 4, kind: input, shape index: {}]   ;;  %s2747_s5 = inlined_call_operand.vmem [shape: f32[25,2,128], index: 5, kind: output, shape index: {0}]   ;;  %s2748_s6 = inlined_call_operand.vmem [shape: f32[25,2,128], index: 6, kind: output, shape index: {1}]  }
   0x1   :  { %s2296_s23 = smov 0  }
   0x2 LB: > { %s2308_s24 = sadd.s32 4294967295, %s2252_s23   ;;  %s2311_s25 = sadd.s32 1, %s2252_s23   ;;  %s2252_s23 = sphi %s2296_s23, %s2751_s23   ;;  %s2248_s22 = sphi %s2294_s22, %s2750_s22   ;;  %s2244_s21 = sphi %s2292_s21, %s2749_s21  }
   0x3   : > { %s21_s26 = ssub.s32 %s2252_s23, %s2311_s25  ;;  %s24_s27 = sadd.s32 1, %s2248_s22 }
   0x4   : > { %p22_p0 = scmp.eq.s32.totalorder %s21_s26, 0  ;;  %p31_p1 = scmp.ne.s32.totalorder %s2248_s22, %s2244_s21 }
   0x5   : > { %p32_p2 = scmp.eq.s32.totalorder %s2252_s23, 0  ;;  %p1536_p4 = scmp.ge.s32.totalorder %s2252_s23, 25 }
   0x6   : > { %s2320_s28 = scalar_select %p22_p0, %s2248_s22, %s24_s27  }
   0x7   : > { %p33_p3 = por %p32_p2, %p31_p1  ;;  %205 = sbr.rel (%p1536_p4) target bundleno = 32 (0x20), region = 32 }
   0xc   : > { %208 = sbr.rel (!%p33_p3) target bundleno = 32 (0x20), region = 36  ;;  %s210_s29 = sand.u32 (%p33_p3), 1, %s2248_s22  }
   0xd   : > { %s2095_s30 = sshll.u32 (%p33_p3), %s2252_s23, 5  ;;  %s1537_s7 = sshll.u32 (%p33_p3), %s210_s29, 7 }
   0xe   : > { %s2328_s10 = scalar_lea.vmem (%p33_p3), %s2742_s0, %s2095_s30  ;;  %s212_s11 = scalar_lea.vmem (%p33_p3), [#allocation4], %s1537_s7 }
   0xf   : > { %v229_v0 = vld [vmem:[%s2328_s10] sm:$0xff] (%p33_p3)  ;;  %v231_v1 = vld [vmem:[%s2328_s10 + $0x8] sm:$0xff] (%p33_p3)  ;;  %v233_v2 = vld [vmem:[%s2328_s10 + $0x10] sm:$0xff] (%p33_p3) }
  0x10   : > { %230 = vst [vmem:[%s212_s11] sm:$0xff] (%p33_p3), %v229_v0  ;;  %v235_v3 = vld [vmem:[%s2328_s10 + $0x18] sm:$0xff] (%p33_p3)  ;;  %v237_v4 = vld [vmem:[%s2328_s10 + $0x320] sm:$0xff] (%p33_p3)  ;;  %v239_v5 = vld [vmem:[%s2328_s10 + $0x328] sm:$0xff] (%p33_p3) }
  0x11   : > { %232 = vst [vmem:[%s212_s11 + $0x8] sm:$0xff] %v231_v1  ;;  %v241_v6 = vld [vmem:[%s2328_s10 + $0x330] sm:$0xff]  ;;  %v243_v7 = vld [vmem:[%s2328_s10 + $0x338] sm:$0xff]  ;;  %v245_v8 = vld [vmem:[%s2328_s10 + $0x640] sm:$0xff] }
  0x12   : > { %234 = vst [vmem:[%s212_s11 + $0x10] sm:$0xff] %v233_v2  ;;  %v247_v9 = vld [vmem:[%s2328_s10 + $0x648] sm:$0xff]  ;;  %v249_v10 = vld [vmem:[%s2328_s10 + $0x650] sm:$0xff]  ;;  %v251_v11 = vld [vmem:[%s2328_s10 + $0x658] sm:$0xff] }
  0x13   : > { %236 = vst [vmem:[%s212_s11 + $0x18] sm:$0xff] %v235_v3  ;;  %v253_v12 = vld [vmem:[%s2328_s10 + $0x960] sm:$0xff]  ;;  %v255_v13 = vld [vmem:[%s2328_s10 + $0x968] sm:$0xff]  ;;  %v257_v14 = vld [vmem:[%s2328_s10 + $0x970] sm:$0xff] }
  0x14   : > { %238 = vst [vmem:[%s212_s11 + $0x20] sm:$0xff] %v237_v4  ;;  %v259_v15 = vld [vmem:[%s2328_s10 + $0x978] sm:$0xff] }
  0x15   : > { %240 = vst [vmem:[%s212_s11 + $0x28] sm:$0xff] %v239_v5 }
  0x16   : > { %242 = vst [vmem:[%s212_s11 + $0x30] sm:$0xff] %v241_v6 }
  0x17   : > { %244 = vst [vmem:[%s212_s11 + $0x38] sm:$0xff] %v243_v7 }
  0x18   : > { %246 = vst [vmem:[%s212_s11 + $0x40] sm:$0xff] %v245_v8 }
  0x19   : > { %248 = vst [vmem:[%s212_s11 + $0x48] sm:$0xff] %v247_v9 }
  0x1a   : > { %250 = vst [vmem:[%s212_s11 + $0x50] sm:$0xff] %v249_v10 }
  0x1b   : > { %252 = vst [vmem:[%s212_s11 + $0x58] sm:$0xff] %v251_v11 }
  0x1c   : > { %254 = vst [vmem:[%s212_s11 + $0x60] sm:$0xff] %v253_v12 }
  0x1d   : > { %256 = vst [vmem:[%s212_s11 + $0x68] sm:$0xff] %v255_v13 }
  0x1e   : > { %258 = vst [vmem:[%s212_s11 + $0x70] sm:$0xff] %v257_v14 }
  0x1f   : > { %260 = vst [vmem:[%s212_s11 + $0x78] sm:$0xff] %v259_v15 }
  0x20 PF: > { %p1541_p5 = scmp.ge.s32.totalorder %s2252_s23, 1  ;;  %p265_p6 = scmp.lt.s32.totalorder %s2252_s23, 26 }
  0x22   : > { %p266_p7 = pnand %p1541_p5, %p265_p6 }
  0x23   : > { %s272_s12 = sand.u32 (!%p266_p7), 1, %s2244_s21   ;;  %p305_p8 = scmp.lt.s32.totalorder (!%p266_p7), %s2308_s24, 24 }
  0x24   : > { %269 = sbr.rel (%p266_p7) target bundleno = 454 (0x1c6), region = 59  ;;  %s1542_s13 = sshll.u32 (!%p266_p7), %s272_s12, 7 }
  0x25   : > { %s2361_s23 = scalar_lea.vmem (!%p266_p7), [#allocation4], %s1542_s13  ;;  %p1545_p9 = scmp.ne.s32.totalorder (!%p266_p7), %s2308_s24, 0 }
  0x29   : > { %s306_s14 = scalar_select %p305_p8, %s2308_s24, 24 }
  0x2a   : > { %317 = sbr.rel (%p1545_p9) target bundleno = 51 (0x33), region = 67 }
  0x2b   : > { %s1543_s15 = sshll.u32 %s306_s14, 1 }
  0x2c   : > { %s2354_s18 = scalar_lea.vmem %s2747_s5, %s1543_s15  ;;  %s2359_s26 = scalar_lea.vmem %s2748_s6, %s1543_s15 }
  0x2f   : > { %v2254_v16 = vmov 0.0  }
  0x30   : > { %318 = vst [vmem:[#allocation2] sm:$0xff] %v2254_v16 }
  0x31   : > { %319 = vst [vmem:[#allocation2 + $0x8] sm:$0xff] %v2254_v16 }
  0x32   : > { %320 = vst [vmem:[#allocation3] sm:$0x3] %v2254_v16 }
  0x33 PF: > { %v2119_v17 = vld [vmem:[%s2743_s1 + $0x38] sm:$0xff]  ;;  %v2118_v20 = vld [vmem:[%s2743_s1 + $0x30] sm:$0xff]  ;;  %v2117_v23 = vld [vmem:[%s2743_s1 + $0x28] sm:$0xff]  ;;  %vm613_vm0 = vcmask 130048  }
  0x34   : > { %v2127_v18 = vld [vmem:[%s2743_s1 + $0x78] sm:$0xff]  ;;  %626 = vmatpush.bf16.msra.mxu0 %v2119_v17  ;;  %v2126_v21 = vld [vmem:[%s2743_s1 + $0x70] sm:$0xff]  ;;  %v2125_v24 = vld [vmem:[%s2743_s1 + $0x68] sm:$0xff] }
  0x35   : > { %v2135_v19 = vld [vmem:[%s2743_s1 + $0xb8] sm:$0xff]  ;;  %655 = vmatpush.bf16.msra.mxu1 %v2127_v18  ;;  %v2134_v22 = vld [vmem:[%s2743_s1 + $0xb0] sm:$0xff]  ;;  %v2136_v25 = vld [vmem:[%s2743_s1 + $0xc0] sm:$0xff] }
  0x36   : > { %684 = vmatpush.bf16.msra.mxu2 %v2135_v19  ;;  %v2133_v26 = vld [vmem:[%s2743_s1 + $0xa8] sm:$0xff]  ;;  %v2097_v27 = vld [vmem:[%s2361_s23 + $0xc] sm:$0xf]  ;;  %720 = vmatpush.bf16.msra.mxu3 %v2136_v25  ;;  %v2114_v36 = vld [vmem:[%s2743_s1 + $0x10] sm:$0xff] }
  0x37   : > { %v1558_v28 = vld [vmem:[%s2361_s23 + $0x18] sm:$0xf0]  ;;  %v2116_v30 = vld [vmem:[%s2743_s1 + $0x20] sm:$0xff]  ;;  %v2115_v33 = vld [vmem:[%s2743_s1 + $0x18] sm:$0xff] }
  0x38   : > { %627 = vmatpush.bf16.msra.mxu0 %v2118_v20  ;;  %v1561_v29 = vor.u32 %v2097_v27, %v1558_v28  ;;  %v2124_v31 = vld [vmem:[%s2743_s1 + $0x60] sm:$0xff]  ;;  %v2123_v34 = vld [vmem:[%s2743_s1 + $0x58] sm:$0xff]  ;;  %v2122_v37 = vld [vmem:[%s2743_s1 + $0x50] sm:$0xff] }
  0x39   : > { %656 = vmatpush.bf16.msra.mxu1 %v2126_v21  ;;  %v2132_v32 = vld [vmem:[%s2743_s1 + $0xa0] sm:$0xff]  ;;  %v2131_v35 = vld [vmem:[%s2743_s1 + $0x98] sm:$0xff]  ;;  %v2130_v38 = vld [vmem:[%s2743_s1 + $0x90] sm:$0xff] }
  0x3a   : > { %685 = vmatpush.bf16.msra.mxu2 %v2134_v22  ;;  %1710 = vmatmul.msk.bf16.vlgmr.msra.gmra.mxu3 %vm613_vm0, %v1561_v29  ;;  %v2101_v39 = vld [vmem:[%s2361_s23 + $0x2c] sm:$0xf]  ;;  %v1574_v40 = vld [vmem:[%s2361_s23 + $0x38] sm:$0xf0]  ;;  %v1548_v47 = vld [vmem:[%s2361_s23] sm:$0xf] }
  0x3b   : > { %v2113_v41 = vld [vmem:[%s2743_s1 + $0x8] sm:$0xff]  ;;  %v1577_v44 = vor.u32 %v2101_v39, %v1574_v40  ;;  %v2112_v45 = vld [vmem:[%s2743_s1] sm:$0xff]  ;;  %v2096_v49 = vld [vmem:[%s2361_s23 + $0x4] sm:$0xf] }
  0x3c   : > { %628 = vmatpush.bf16.msra.mxu0 %v2117_v23  ;;  %v2121_v42 = vld [vmem:[%s2743_s1 + $0x48] sm:$0xff]  ;;  %v2120_v46 = vld [vmem:[%s2743_s1 + $0x40] sm:$0xff]  ;;  %v1556_v52 = vld [vmem:[%s2361_s23 + $0x8] sm:$0xf] }
  0x3d   : > { %657 = vmatpush.bf16.msra.mxu1 %v2125_v24  ;;  %v2129_v43 = vld [vmem:[%s2743_s1 + $0x88] sm:$0xff]  ;;  %v2098_v48 = vld [vmem:[%s2361_s23 + $0xc] sm:$0xf0]  ;;  %v2105_v57 = vld [vmem:[%s2361_s23 + $0x4c] sm:$0xf] }
  0x3e   : > { %686 = vmatpush.bf16.msra.mxu2 %v2133_v26  ;;  %v1550_v50 = vld [vmem:[%s2361_s23 + $0x10] sm:$0xf0]  ;;  %v2099_v53 = vld [vmem:[%s2361_s23 + $0x14] sm:$0xf0]  ;;  %v1549_v54 = vor.u32 %v2098_v48, %v1548_v47  ;;  %v1590_v58 = vld [vmem:[%s2361_s23 + $0x58] sm:$0xf0] }
  0x3f   : > { %v2128_v51 = vld [vmem:[%s2743_s1 + $0x80] sm:$0xff]  ;;  %v1553_v55 = vor.u32 %v2096_v49, %v1550_v50  ;;  %v1557_v56 = vor.u32 %v2099_v53, %v1556_v52  ;;  %v1593_v59 = vor.u32 %v2105_v57, %v1590_v58  ;;  %v1564_v60 = vld [vmem:[%s2361_s23 + $0x20] sm:$0xf]  ;;  %v2100_v62 = vld [vmem:[%s2361_s23 + $0x24] sm:$0xf] }
  0x40   : > { %629 = vmatpush.bf16.msra.mxu0 %v2116_v30  ;;  %v2102_v61 = vld [vmem:[%s2361_s23 + $0x2c] sm:$0xf0]  ;;  %v1566_v63 = vld [vmem:[%s2361_s23 + $0x30] sm:$0xf0]  ;;  %v1572_v0 = vld [vmem:[%s2361_s23 + $0x28] sm:$0xf] }
  0x41   : > { %658 = vmatpush.bf16.msra.mxu1 %v2124_v31  ;;  %v2103_v1 = vld [vmem:[%s2361_s23 + $0x34] sm:$0xf0]  ;;  %v1565_v2 = vor.u32 %v2102_v61, %v1564_v60  ;;  %v1569_v3 = vor.u32 %v2100_v62, %v1566_v63  ;;  %v2109_v5 = vld [vmem:[%s2361_s23 + $0x6c] sm:$0xf]  ;;  %v1606_v6 = vld [vmem:[%s2361_s23 + $0x78] sm:$0xf0] }
  0x42   : > { %687 = vmatpush.bf16.msra.mxu2 %v2132_v32  ;;  %v1573_v4 = vor.u32 %v2103_v1, %v1572_v0  ;;  %v1609_v7 = vor.u32 %v2109_v5, %v1606_v6  ;;  %v1580_v8 = vld [vmem:[%s2361_s23 + $0x40] sm:$0xf]  ;;  %v2106_v9 = vld [vmem:[%s2361_s23 + $0x4c] sm:$0xf0]  ;;  %v2104_v10 = vld [vmem:[%s2361_s23 + $0x44] sm:$0xf] }
  0x43   : > { %v1582_v11 = vld [vmem:[%s2361_s23 + $0x50] sm:$0xf0]  ;;  %v1588_v12 = vld [vmem:[%s2361_s23 + $0x48] sm:$0xf]  ;;  %v2107_v13 = vld [vmem:[%s2361_s23 + $0x54] sm:$0xf0]  ;;  %v1581_v14 = vor.u32 %v2106_v9, %v1580_v8 }
  0x44   : > { %630 = vmatpush.bf16.msra.mxu0 %v2115_v33  ;;  %v1585_v15 = vor.u32 %v2104_v10, %v1582_v11  ;;  %v1589_v16 = vor.u32 %v2107_v13, %v1588_v12  ;;  %v1596_v17 = vld [vmem:[%s2361_s23 + $0x60] sm:$0xf]  ;;  %v2110_v18 = vld [vmem:[%s2361_s23 + $0x6c] sm:$0xf0]  ;;  %v2108_v19 = vld [vmem:[%s2361_s23 + $0x64] sm:$0xf] }
  0x45   : > { %659 = vmatpush.bf16.msra.mxu1 %v2123_v34  ;;  %v1598_v20 = vld [vmem:[%s2361_s23 + $0x70] sm:$0xf0]  ;;  %v1604_v21 = vld [vmem:[%s2361_s23 + $0x68] sm:$0xf]  ;;  %v2111_v22 = vld [vmem:[%s2361_s23 + $0x74] sm:$0xf0]  ;;  %v1597_v23 = vor.u32 %v2110_v18, %v1596_v17 }
  0x46   : > { %688 = vmatpush.bf16.msra.mxu2 %v2131_v35  ;;  %v1601_v24 = vor.u32 %v2108_v19, %v1598_v20  ;;  %v1605_v25 = vor.u32 %v2111_v22, %v1604_v21  ;;  %v2152_v26 = vld [vmem:[%s2745_s3 + $0x78] sm:$0xff]  ;;  %v2151_v28 = vld [vmem:[%s2745_s3 + $0x70] sm:$0xff]  ;;  %v2166_v39 = vld [vmem:[%s2745_s3 + $0xe8] sm:$0xff] }
  0x47   : > { %v2168_v27 = vld [vmem:[%s2745_s3 + $0xf8] sm:$0xff]  ;;  %864 = vmatpush.bf16.msrb.mxu3 %v2152_v26  ;;  %v2167_v32 = vld [vmem:[%s2745_s3 + $0xf0] sm:$0xff]  ;;  %v2149_v47 = vld [vmem:[%s2745_s3 + $0x60] sm:$0xff] }
  0x48   : > { %631 = vmatpush.bf16.msra.mxu0 %v2114_v36  ;;  %v2144_v29 = vld [vmem:[%s2745_s3 + $0x38] sm:$0xff]  ;;  %v2143_v33 = vld [vmem:[%s2745_s3 + $0x30] sm:$0xff]  ;;  %v2150_v36 = vld [vmem:[%s2745_s3 + $0x68] sm:$0xff] }
  0x49   : > { %660 = vmatpush.bf16.msra.mxu1 %v2122_v37  ;;  %v2160_v30 = vld [vmem:[%s2745_s3 + $0xb8] sm:$0xff]  ;;  %v2159_v37 = vld [vmem:[%s2745_s3 + $0xb0] sm:$0xff]  ;;  %v2165_v48 = vld [vmem:[%s2745_s3 + $0xe0] sm:$0xff] }
  0x4a   : > { %689 = vmatpush.bf16.msra.mxu2 %v2130_v38  ;;  %1711 = vmatmul.msk.bf16.gmra.mxu3 %vm613_vm0, %v1577_v44  ;;  %v2142_v38 = vld [vmem:[%s2745_s3 + $0x28] sm:$0xff]  ;;  %v2139_v49 = vld [vmem:[%s2745_s3 + $0x10] sm:$0xff]  ;;  %v2157_v50 = vld [vmem:[%s2745_s3 + $0xa0] sm:$0xff] }
  0x4b   : > { %865 = vmatpush.bf16.msrb.mxu3 %v2151_v28  ;;  %v2156_v57 = vld [vmem:[%s2745_s3 + $0x98] sm:$0xff]  ;;  %v2137_v60 = vld [vmem:[%s2745_s3] sm:$0xff]  ;;  %v2155_v61 = vld [vmem:[%s2745_s3 + $0x90] sm:$0xff] }
  0x4c   : > { %632 = vmatpush.bf16.msra.mxu0 %v2113_v41  ;;  %v2141_v41 = vld [vmem:[%s2745_s3 + $0x20] sm:$0xff]  ;;  %v2164_v58 = vld [vmem:[%s2745_s3 + $0xd8] sm:$0xff]  ;;  %v2163_v63 = vld [vmem:[%s2745_s3 + $0xd0] sm:$0xff] }
  0x4d   : > { %661 = vmatpush.bf16.msra.mxu1 %v2121_v42  ;;  %v2184_v0 = vld [vmem:[%s2745_s3 + $0x178] sm:$0xff]  ;;  %v2154_v5 = vld [vmem:[%s2745_s3 + $0x88] sm:$0xff]  ;;  %v2145_v8 = vld [vmem:[%s2745_s3 + $0x40] sm:$0xff] }
  0x4e   : > { %690 = vmatpush.bf16.msra.mxu2 %v2129_v43  ;;  %v2162_v6 = vld [vmem:[%s2745_s3 + $0xc8] sm:$0xff]  ;;  %v2153_v9 = vld [vmem:[%s2745_s3 + $0x80] sm:$0xff]  ;;  %v2176_v12 = vld [vmem:[%s2745_s3 + $0x138] sm:$0xff] }
  0x4f   : > { %866 = vmatpush.bf16.msrb.mxu3 %v2150_v36  ;;  %v2161_v11 = vld [vmem:[%s2745_s3 + $0xc0] sm:$0xff]  ;;  %v2182_v13 = vld [vmem:[%s2745_s3 + $0x168] sm:$0xff]  ;;  %v2200_v17 = vld [vmem:[%s2745_s3 + $0x1f8] sm:$0xff] }
  0x50   : > { %633 = vmatpush.bf16.msra.mxu0 %v2112_v45  ;;  %v2158_v45 = vld [vmem:[%s2745_s3 + $0xa8] sm:$0xff]  ;;  %v2175_v19 = vld [vmem:[%s2745_s3 + $0x130] sm:$0xff]  ;;  %v2181_v20 = vld [vmem:[%s2745_s3 + $0x160] sm:$0xff] }
  0x51   : > { %662 = vmatpush.bf16.msra.mxu1 %v2120_v46  ;;  %v2140_v46 = vld [vmem:[%s2745_s3 + $0x18] sm:$0xff]  ;;  %v2191_v21 = vld [vmem:[%s2745_s3 + $0x1b0] sm:$0xff]  ;;  %v2190_v28 = vld [vmem:[%s2745_s3 + $0x1a8] sm:$0xff] }
  0x52   : > { %691 = vmatpush.bf16.msra.mxu2 %v2128_v51  ;;  %v2199_v22 = vld [vmem:[%s2745_s3 + $0x1f0] sm:$0xff]  ;;  %v2197_v36 = vld [vmem:[%s2745_s3 + $0x1e0] sm:$0xff] }
  0x53   : > { %634 = vmatmul.bf16.vlgmr.msra.gmra.mxu0 %v1549_v54  ;;  %867 = vmatpush.bf16.msrb.mxu3 %v2149_v47 }
  0x54   : > { %663 = vmatmul.bf16.vlgmr.msra.gmra.mxu1 %v1553_v55  ;;  %925 = vmatpush.bf16.msrb.mxu0 %v2144_v29  ;;  %v2148_v55 = vld [vmem:[%s2745_s3 + $0x58] sm:$0xff]  ;;  %v2198_v29 = vld [vmem:[%s2745_s3 + $0x1e8] sm:$0xff] }
  0x55   : > { %692 = vmatmul.bf16.vlgmr.msra.gmra.mxu2 %v1557_v56  ;;  %1005 = vmatpush.bf16.msrb.mxu1 %v2160_v30  ;;  %v2138_v56 = vld [vmem:[%s2745_s3 + $0x8] sm:$0xff]  ;;  %v2173_v30 = vld [vmem:[%s2745_s3 + $0x120] sm:$0xff] }
  0x56   : > { %1086 = vmatpush.bf16.msrb.mxu2 %v2168_v27 }
  0x57   : > { %868 = vmatpush.bf16.msrb.mxu3 %v2148_v55 }
  0x58   : > { %926 = vmatpush.bf16.msrb.mxu0 %v2143_v33  ;;  %v2189_v33 = vld [vmem:[%s2745_s3 + $0x1a0] sm:$0xff] }
  0x59   : > { %1006 = vmatpush.bf16.msrb.mxu1 %v2159_v37 }
  0x5a   : > { %1712 = vmatmul.msk.bf16.gmra.mxu3 %vm613_vm0, %v1593_v59  ;;  %1087 = vmatpush.bf16.msrb.mxu2 %v2167_v32  ;;  %v2147_v59 = vld [vmem:[%s2745_s3 + $0x50] sm:$0xff] }
  0x5b   : > { %869 = vmatpush.bf16.msrb.mxu3 %v2147_v59  ;;  %v2179_v32 = vld [vmem:[%s2745_s3 + $0x150] sm:$0xff] }
  0x5c   : > { %927 = vmatpush.bf16.msrb.mxu0 %v2142_v38 }
  0x5d   : > { %1007 = vmatpush.bf16.msrb.mxu1 %v2158_v45  ;;  %v2178_v45 = vld [vmem:[%s2745_s3 + $0x148] sm:$0xff] }
  0x5e   : > { %1088 = vmatpush.bf16.msrb.mxu2 %v2166_v39 }
  0x60   : > { %928 = vmatpush.bf16.msrb.mxu0 %v2141_v41  ;;  %v2172_v41 = vld [vmem:[%s2745_s3 + $0x118] sm:$0xff] }
  0x61   : > { %1008 = vmatpush.bf16.msrb.mxu1 %v2157_v50 }
  0x62   : > { %1089 = vmatpush.bf16.msrb.mxu2 %v2165_v48 }
  0x63   : > { %639 = vmatmul.bf16.gmra.mxu0 %v1565_v2 }
  0x64   : > { %668 = vmatmul.bf16.gmra.mxu1 %v1569_v3  ;;  %929 = vmatpush.bf16.msrb.mxu0 %v2140_v46  ;;  %v2188_v46 = vld [vmem:[%s2745_s3 + $0x198] sm:$0xff] }
  0x65   : > { %697 = vmatmul.bf16.gmra.mxu2 %v1573_v4  ;;  %1009 = vmatpush.bf16.msrb.mxu1 %v2156_v57  ;;  %v2146_v4 = vld [vmem:[%s2745_s3 + $0x48] sm:$0xff]  ;;  %v2177_v57 = vld [vmem:[%s2745_s3 + $0x140] sm:$0xff] }
  0x66   : > { %1090 = vmatpush.bf16.msrb.mxu2 %v2164_v58  ;;  %870 = vmatpush.bf16.msrb.mxu3 %v2146_v4  ;;  %v2187_v58 = vld [vmem:[%s2745_s3 + $0x190] sm:$0xff]  ;;  %v2170_v4 = vld [vmem:[%s2745_s3 + $0x108] sm:$0xff] }
  0x68   : > { %930 = vmatpush.bf16.msrb.mxu0 %v2139_v49  ;;  %v2196_v49 = vld [vmem:[%s2745_s3 + $0x1d8] sm:$0xff] }
  0x69   : > { %1010 = vmatpush.bf16.msrb.mxu1 %v2155_v61 }
  0x6a   : > { %1713 = vmatmul.msk.bf16.gmra.mxu3 %vm613_vm0, %v1609_v7  ;;  %1091 = vmatpush.bf16.msrb.mxu2 %v2163_v63  ;;  %v2183_v7 = vld [vmem:[%s2745_s3 + $0x170] sm:$0xff] }
  0x6b   : > { %871 = vmatpush.bf16.msrb.mxu3 %v2145_v8 }
  0x6c   : > { %931 = vmatpush.bf16.msrb.mxu0 %v2138_v56  ;;  %v2171_v56 = vld [vmem:[%s2745_s3 + $0x110] sm:$0xff] }
  0x6d   : > { %1011 = vmatpush.bf16.msrb.mxu1 %v2154_v5  ;;  %v2186_v5 = vld [vmem:[%s2745_s3 + $0x188] sm:$0xff] }
  0x6e   : > { %1092 = vmatpush.bf16.msrb.mxu2 %v2162_v6 }
  0x6f   : > { %1165 = vmatpush.bf16.msra.mxu3 %v2176_v12 }
  0x70   : > { %932 = vmatpush.bf16.msrb.mxu0 %v2137_v60 }
  0x71   : > { %1012 = vmatpush.bf16.msrb.mxu1 %v2153_v9  ;;  %v754_v9 = vld [vmem:[#allocation2] sm:$0xff] }
  0x72   : > { %1093 = vmatpush.bf16.msrb.mxu2 %v2161_v11  ;;  %v2169_v11 = vld [vmem:[%s2745_s3 + $0x100] sm:$0xff]  ;;  %vm756_vm1 = vcmp.gt.f32.partialorder %v754_v9, 1.0 }
  0x73   : > { %644 = vmatmul.bf16.gmra.mxu0 %v1581_v14  ;;  %1166 = vmatpush.bf16.msra.mxu3 %v2175_v19 }
  0x74   : > { %673 = vmatmul.bf16.gmra.mxu1 %v1585_v15  ;;  %1249 = vmatpush.bf16.msra.mxu0 %v2184_v0 }
  0x75   : > { %702 = vmatmul.bf16.gmra.mxu2 %v1589_v16  ;;  %v2192_v16 = vld [vmem:[%s2745_s3 + $0x1b8] sm:$0xff] }
  0x76   : > { %1330 = vmatpush.bf16.msra.mxu1 %v2192_v16  ;;  %1411 = vmatpush.bf16.msra.mxu2 %v2200_v17 }
  0x78   : > { %1250 = vmatpush.bf16.msra.mxu0 %v2183_v7 }
  0x7a   : > { %1331 = vmatpush.bf16.msra.mxu1 %v2191_v21  ;;  %1412 = vmatpush.bf16.msra.mxu2 %v2199_v22 }
  0x7c   : > { %1251 = vmatpush.bf16.msra.mxu0 %v2182_v13 }
  0x7e   : > { %1332 = vmatpush.bf16.msra.mxu1 %v2190_v28  ;;  %1413 = vmatpush.bf16.msra.mxu2 %v2198_v29 }
  0x80   : > { %1252 = vmatpush.bf16.msra.mxu0 %v2181_v20 }
  0x82   : > { %1333 = vmatpush.bf16.msra.mxu1 %v2189_v33  ;;  %1414 = vmatpush.bf16.msra.mxu2 %v2197_v36 }
  0x83   : > { %649 = vmatmul.bf16.gmra.mxu0 %v1597_v23 }
  0x84   : > { %678 = vmatmul.bf16.gmra.mxu1 %v1601_v24  ;;  %v2174_v24 = vld [vmem:[%s2745_s3 + $0x128] sm:$0xff] }
  0x85   : > { %707 = vmatmul.bf16.gmra.mxu2 %v1605_v25  ;;  %v2180_v25 = vld [vmem:[%s2745_s3 + $0x158] sm:$0xff]  ;;  %1167 = vmatpush.bf16.msra.mxu3 %v2174_v24 }
  0x86   : > { %1253 = vmatpush.bf16.msra.mxu0 %v2180_v25  ;;  %1334 = vmatpush.bf16.msra.mxu1 %v2188_v46  ;;  %v2256_v46 = vmov 1.0|1.0  }
  0x87   : > { %1415 = vmatpush.bf16.msra.mxu2 %v2196_v49 }
  0x89   : > { %1168 = vmatpush.bf16.msra.mxu3 %v2173_v30  ;;  %v755_v30 = vld [vmem:[#allocation2 + $0x8] sm:$0xff] }
  0x8a   : > { %1254 = vmatpush.bf16.msra.mxu0 %v2179_v32  ;;  %1335 = vmatpush.bf16.msra.mxu1 %v2187_v58  ;;  %vm757_vm2 = vcmp.gt.f32.partialorder %v755_v30, 1.0 }
  0x8d   : > { %1169 = vmatpush.bf16.msra.mxu3 %v2172_v41 }
  0x8e   : > { %1255 = vmatpush.bf16.msra.mxu0 %v2178_v45  ;;  %1336 = vmatpush.bf16.msra.mxu1 %v2186_v5 }
  0x91   : > { %1170 = vmatpush.bf16.msra.mxu3 %v2171_v56 }
  0x92   : > { %1256 = vmatpush.bf16.msra.mxu0 %v2177_v57 }
  0x95   : > { %1171 = vmatpush.bf16.msra.mxu3 %v2170_v4 }
  0x99   : > { %1172 = vmatpush.bf16.msra.mxu3 %v2169_v11 }
  0xbd   : > { %v2490_v31 = vpop.f32.mrf.mxu3 }
  0xc5   : > { %v2514_v40 = vpop.f32.mrf.mxu3 }
  0xcd   : > { %v2545_v52 = vpop.f32.mrf.mxu3 }
  0xd0   : > { %v2498_v34 = vpop.f32.mrf.mxu0 }
  0xd1   : > { %v2500_v35 = vpop.f32.mrf.mxu1 }
  0xd2   : > { %v665_v50 = vadd.f32 %v2500_v35, %v2498_v34  ;;  %v2195_v34 = vld [vmem:[%s2745_s3 + $0x1d0] sm:$0xff] }
  0xd3   : > { %1416 = vmatpush.bf16.msra.mxu2 %v2195_v34 }
  0xd5   : > { %v2584_v3 = vpop.f32.mrf.mxu3 }
  0xd8   : > { %v2519_v42 = vpop.f32.mrf.mxu2  ;;  %v2521_v43 = vpop.f32.mrf.mxu0 }
  0xd9   : > { %v2523_v44 = vpop.f32.mrf.mxu1 }
  0xda   : > { %v667_v12 = vadd.f32 %v2523_v44, %v2521_v43  ;;  %v2228_v43 = vld [vmem:[%s2744_s2] ss:$0 sm:$0xff] }
  0xdd   : > { %v732_v18 = vpop.f32.mrf.mxu3 }
  0xe0   : > { %v2543_v51 = vpop.f32.mrf.mxu2  ;;  %v2547_v53 = vpop.f32.mrf.mxu0 }
  0xe1   : > { %v2549_v54 = vpop.f32.mrf.mxu1  ;;  %v696_v44 = vadd.f32 %v2543_v51, %v667_v12 }
  0xe2   : > { %v670_v55 = vadd.f32 %v2549_v54, %v2547_v53  ;;  %v694_v54 = vadd.f32 %v2519_v42, %v665_v50  ;;  %v2194_v42 = vld [vmem:[%s2745_s3 + $0x1c8] sm:$0xff] }
  0xe3   : > { %1417 = vmatpush.bf16.msra.mxu2 %v2194_v42  ;;  %v725_v51 = vadd.f32 %v2514_v40, %v696_v44 }
  0xe5   : > { %v2657_v37 = vpop.f32.mrf.mxu3 }
  0xe8   : > { %v2572_v62 = vpop.f32.mrf.mxu2  ;;  %v2580_v1 = vpop.f32.mrf.mxu0 }
  0xe9   : > { %v2582_v2 = vpop.f32.mrf.mxu1  ;;  %v699_v59 = vadd.f32 %v2572_v62, %v670_v55  ;;  %v723_v62 = vadd.f32 %v2490_v31, %v694_v54  ;;  %v2185_v31 = vld [vmem:[%s2745_s3 + $0x180] sm:$0xff] }
  0xea   : > { %v672_v13 = vadd.f32 %v2582_v2, %v2580_v1  ;;  %v762_v2 = vmul.f32 0.95, %v754_v9  ;;  %1337 = vmatpush.bf16.msra.mxu1 %v2185_v31 }
  0xeb   : > { %v728_v6 = vadd.f32 %v2545_v52, %v699_v59  ;;  %v2193_v52 = vld [vmem:[%s2745_s3 + $0x1c0] sm:$0xff] }
  0xec   : > { %1418 = vmatpush.bf16.msra.mxu2 %v2193_v52 }
  0xed   : > { %v737_v60 = vpop.f32.mrf.mxu3 }
  0xf0   : > { %v2604_v10 = vpop.f32.mrf.mxu2  ;;  %v645_v14 = vpop.f32.mrf.mxu0 }
  0xf1   : > { %v674_v15 = vpop.f32.mrf.mxu1  ;;  %v701_v1 = vadd.f32 %v2604_v10, %v672_v13 }
  0xf2   : > { %v675_v39 = vadd.f32 %v674_v15, %v645_v14 }
  0xf3   : > { %v730_v10 = vadd.f32 %v2584_v3, %v701_v1 }
  0xf5   : > { %v739_v25 = vpop.f32.mrf.mxu3 }
  0xf8   : > { %v703_v23 = vpop.f32.mrf.mxu2  ;;  %v647_v26 = vpop.f32.mrf.mxu0 }
  0xf9   : > { %v676_v27 = vpop.f32.mrf.mxu1  ;;  %v704_v35 = vadd.f32 %v703_v23, %v675_v39  ;;  %v763_v39 = vmul.f32 0.95, %v755_v30 }
  0xfa   : > { %v677_v7 = vadd.f32 %v676_v27, %v647_v26  ;;  %v2255_v26 = vmov 0.0  }
  0xfb   : > { %v733_v63 = vadd.f32 %v732_v18, %v704_v35  ;;  %v1714_v27 = vsel %vm756_vm1, 1.0, %v2255_v26  ;;  %v1715_v40 = vsel %vm757_vm2, 1.0, %v2255_v26 }
  0xfd   : > { %v742_v16 = vmax.f32 %v723_v62, %v733_v63 }
 0x100   : > { %v705_v38 = vpop.f32.mrf.mxu2  ;;  %v650_v47 = vpop.f32.mrf.mxu0 }
 0x101   : > { %v679_v48 = vpop.f32.mrf.mxu1  ;;  %v706_v17 = vadd.f32 %v705_v38, %v677_v7 }
 0x102   : > { %v680_v53 = vadd.f32 %v679_v48, %v650_v47 }
 0x103   : > { %v735_v22 = vadd.f32 %v2657_v37, %v706_v17 }
 0x105   : > { %v745_v32 = vmax.f32 %v725_v51, %v735_v22 }
 0x108   : > { %v708_v61 = vpop.f32.mrf.mxu2  ;;  %v652_v14 = vpop.f32.mrf.mxu0 }
 0x109   : > { %v709_v0 = vadd.f32 %v708_v61, %v680_v53  ;;  %v681_v15 = vpop.f32.mrf.mxu1 }
 0x10a   : > { %v682_v20 = vadd.f32 %v681_v15, %v652_v14 }
 0x10b   : > { %v738_v8 = vadd.f32 %v737_v60, %v709_v0 }
 0x10d   : > { %v743_v18 = vmax.f32 %v728_v6, %v738_v8 }
 0x10f   : > { %v744_v19 = vmax.f32 %v742_v16, %v743_v18  ;;  %v1430_v16 = vld [vmem:[#allocation3] sm:$0x3]  ;;  %v2229_v18 = vld [vmem:[%s2746_s4] ss:$0 sm:$0xff] }
 0x110   : > { %v710_v21 = vpop.f32.mrf.mxu2  ;;  %vm1431_vm7 = vcmp.gt.f32.partialorder %v1430_v16, 1.0  ;;  %v1434_v44 = vmul.f32 0.95, %v1430_v16 }
 0x111   : > { %v752_v23 = vadd.f32 %v2228_v43, %v744_v19  ;;  %v711_v24 = vadd.f32 %v710_v21, %v682_v20  ;;  %v2090_v20 = vsel %vm1431_vm7, 1.0, %v2255_v26 }
 0x113   : > { %v740_v28 = vadd.f32 %v739_v25, %v711_v24  ;;  %v764_v29 = vadd.f32 %v762_v2, %v752_v23 }
 0x115   : > { %v746_v33 = vmax.f32 %v730_v10, %v740_v28  ;;  %v766_v36 = vsub.f32 %v764_v29, %v1714_v27 }
 0x117   : > { %v747_v38 = vmax.f32 %v745_v32, %v746_v33  ;;  %vm768_vm3 = vcmp.gt.f32.partialorder %v766_v36, 1.0  ;;  %776 = vst [vmem:[#allocation2] sm:$0xff] %v766_v36 }
 0x118   : > { %v1716_v37 = vsel %vm768_vm3, 1.0, %v2255_v26  ;;  %vm1798_vm4 = vmpackc.low %vm768_vm3, %vm768_vm3 }
 0x119   : > { %v753_v41 = vadd.f32 %v2228_v43, %v747_v38  ;;  %v774_v45 = vpack.c.bf16 %v1716_v37, %v1716_v37  ;;  %1799 = vmatmul.msk.bf16.vlgmr.msrb.gmra.mxu0 %vm1798_vm4, %v2256_v46 }
 0x11b   : > { %v765_v3 = vadd.f32 %v763_v39, %v753_v41  ;;  %v812_v47 = vunpack.c.l.b16 %v774_v45 }
 0x11d   : > { %v767_v48 = vsub.f32 %v765_v3, %v1715_v40  ;;  %v813_v49 = vpack.c.b16 %v812_v47, %v812_v47 }
 0x11f   : > { %777 = vst [vmem:[#allocation2 + $0x8] sm:$0xff] %v767_v48  ;;  %v814_v50 = vrot.slane %v813_v49, 1  ;;  %v955_v55 = vrot.slane %v813_v49, 2  ;;  %v1036_v56 = vrot.slane %v813_v49, 3  ;;  %vm769_vm5 = vcmp.gt.f32.partialorder %v767_v48, 1.0 }
 0x120   : > { %v1717_v57 = vsel %vm769_vm5, 1.0, %v2255_v26  ;;  %vm1944_vm6 = vmpackc.low %vm769_vm5, %vm769_vm5 }
 0x121   : > { %872 = vmatmul.bf16.vlgmr.msrb.gmra.mxu3 %v814_v50  ;;  %1013 = vmatmul.bf16.vlgmr.msrb.gmra.mxu1 %v955_v55  ;;  %v775_v58 = vpack.c.bf16 %v1717_v57, %v1717_v57 }
 0x122   : > { %1094 = vmatmul.bf16.vlgmr.msrb.gmra.mxu2 %v1036_v56 }
 0x123   : > { %v1197_v34 = vunpack.c.l.b16 %v775_v58 }
 0x125   : > { %v1198_v35 = vpack.c.b16 %v1197_v34, %v1197_v34 }
 0x127   : > { %v1199_v53 = vrot.slane %v1198_v35, 1  ;;  %v1280_v54 = vrot.slane %v1198_v35, 2  ;;  %v1361_v59 = vrot.slane %v1198_v35, 3 }
 0x129   : > { %1257 = vmatmul.bf16.vlgmr.msra.gmra.mxu0 %v1199_v53 }
 0x131   : > { %1945 = vmatmul.msk.bf16.vlgmr.msra.gmra.mxu3 %vm1944_vm6, %v2256_v46  ;;  %1338 = vmatmul.bf16.vlgmr.msra.gmra.mxu1 %v1280_v54 }
 0x132   : > { %1419 = vmatmul.bf16.vlgmr.msra.gmra.mxu2 %v1361_v59 }
 0x196   : > { %v934_v60 = vpop.f32.mrf.mxu0 }
 0x19e   : > { %v936_v61 = vpop.f32.mrf.mxu0  ;;  %v1014_v63 = vpop.f32.mrf.mxu1 }
 0x1a4   : > { %v873_v0 = vpop.f32.mrf.mxu3 }
 0x1a5   : > { %v1095_v4 = vpop.f32.mrf.mxu2  ;;  %v935_v62 = vadd.f32 %v934_v60, %v873_v0 }
 0x1a6   : > { %v1016_v5 = vpop.f32.mrf.mxu1  ;;  %v1258_v42 = vpop.f32.mrf.mxu0 }
 0x1a7   : > { %v1018_v11 = vadd.f32 %v1014_v63, %v935_v62 }
 0x1a9   : > { %v1099_v12 = vadd.f32 %v1095_v4, %v1018_v11 }
 0x1ac   : > { %v875_v6 = vpop.f32.mrf.mxu3 }
 0x1ad   : > { %v1097_v7 = vpop.f32.mrf.mxu2 }
 0x1ae   : > { %v1260_v8 = vpop.f32.mrf.mxu0  ;;  %v1339_v9 = vpop.f32.mrf.mxu1 }
 0x1b4   : > { %v1174_v13 = vpop.f32.mrf.mxu3 }
 0x1b5   : > { %v1178_v14 = vadd.f32 %v1174_v13, %v1099_v12  ;;  %v1420_v15 = vpop.f32.mrf.mxu2 }
 0x1b6   : > { %v1341_v31 = vpop.f32.mrf.mxu1 }
 0x1b7   : > { %v1262_v52 = vadd.f32 %v1258_v42, %v1178_v14 }
 0x1b9   : > { %v1343_v17 = vadd.f32 %v1339_v9, %v1262_v52 }
 0x1bb   : > { %v1424_v43 = vadd.f32 %v1420_v15, %v1343_v17 }
 0x1bc   : > { %v1176_v1 = vpop.f32.mrf.mxu3 }
 0x1bd   : > { %v1429_v2 = vadd.f32 %v2229_v18, %v1424_v43  ;;  %v1422_v19 = vpop.f32.mrf.mxu2 }
 0x1bf   : > { %v1435_v21 = vadd.f32 %v1434_v44, %v1429_v2 }
 0x1c1   : > { %v1436_v22 = vsub.f32 %v1435_v21, %v2090_v20 }
 0x1c3   : > { %vm1437_vm8 = vcmp.gt.f32.partialorder %v1436_v22, 1.0  ;;  %1441 = vst [vmem:[%s2359_s26] sm:$0x3] %v1436_v22 }
 0x1c4   : > { %v2091_v23 = vsel %vm1437_vm8, 1.0, %v2255_v26  ;;  %1442 = vst [vmem:[#allocation3] sm:$0x3] %v1436_v22 }
 0x1c5   : > { %1440 = vst [vmem:[%s2354_s18] sm:$0x3] %v2091_v23 }
 0x1c6 PF: > { %p14_p10 = scmp.ge.s32.totalorder %s2311_s25, 27   ;;  %s2749_s21 = smov %s2248_s22 }
 0x1c7   : > { %s2750_s22 = smov %s2320_s28  ;;  %s2751_s23 = smov %s2311_s25 }
 0x1c8   :  { %16 = sbr.rel (!%p14_p10) target bundleno = 2 (0x2), region = 121 }

</bundles_post_ra>
